<compile_context>
chip_gen: v7x
topology: tpu7x:2x2x1
jax: 0.10.0
libtpu: 0.0.40
codegen_flags: <defaults>
</compile_context>

<pallas_src>
import math
import numpy as np
import jax
import jax.numpy as jnp
from jax.experimental import pallas as pl
from jax.experimental.pallas import tpu as pltpu


# --------------------------------------------------------------------------- #
# Kernels
# --------------------------------------------------------------------------- #
def _linkpred_kernel_fused(zs_ref, zd_ref, w_ref, bh_ref, wf_ref, bf_ref,
                           out_ref):
    # In-kernel bf16 cast (VPU, hidden under the MXU).
    zs = zs_ref[...].astype(jnp.bfloat16)
    zd = zd_ref[...].astype(jnp.bfloat16)
    # Lane-concat -> one K=2C dot that fills the 256-deep MXU (v6e / v7x).
    zcat = jnp.concatenate([zs, zd], axis=-1)                      # [tile_b, 2C]
    h = jnp.dot(zcat, w_ref[...],
                preferred_element_type=jnp.float32) + bh_ref[...]  # [tile_b, C]
    h = jnp.maximum(h, 0.0)                                        # relu (VPU)
    # lin_final: one scalar per row -> elementwise mul + lane reduce (XLU).
    s = jnp.sum(h * wf_ref[...], axis=-1)                          # [tile_b]
    # Lane-dense store: (1, 1, tile_b) row -> unmasked vst, wide writeback.
    out_ref[...] = s.reshape(1, 1, -1) + bf_ref[0]


def _linkpred_kernel_split(zs_ref, zd_ref, w1_ref, w2_ref, bh_ref, wf_ref,
                           bf_ref, out_ref):
    # Split-concat form (v5e / older chips): cat([zs, zd]) @ W.T == zs@W1 + zd@W2.
    zs = zs_ref[...].astype(jnp.bfloat16)
    zd = zd_ref[...].astype(jnp.bfloat16)
    h = (jnp.dot(zs, w1_ref[...], preferred_element_type=jnp.float32)
         + jnp.dot(zd, w2_ref[...], preferred_element_type=jnp.float32)
         + bh_ref[...])
    h = jnp.maximum(h, 0.0)
    s = jnp.sum(h * wf_ref[...], axis=-1)
    out_ref[...] = s.reshape(1, 1, -1) + bf_ref[0]


# --------------------------------------------------------------------------- #
# Heuristics
# --------------------------------------------------------------------------- #
def _round_up(x, m):
    return ((x + m - 1) // m) * m


def _pick_tile_b(B):
    # Single tile for small batches; otherwise ~B/2 (keeps >= 2 grid steps so
    # v7x's two TensorCores both get work), clamped to [256, 1024], 8-aligned.
    if B <= 256:
        return _round_up(B, 8)
    return max(256, min(1024, _round_up(pl.cdiv(B, 2), 8)))


def _prefer_fused_k(C):
    # v6e / v7x MXUs are 256 deep -> fuse the two K=C dots into one K=2C dot.
    # v5e (and older, 128-deep MXUs): keep the split form.
    if C % 128 != 0:
        return False
    try:
        kind = jax.devices()[0].device_kind.lower()
    except Exception:
        return False
    return ("v6" in kind) or ("v7" in kind)


# --------------------------------------------------------------------------- #
# Wrapper
# --------------------------------------------------------------------------- #
def link_predictor(params, z_src, z_dst, *, tile_b=None, fuse_k=None):
    B, C = z_src.shape
    assert z_dst.shape == (B, C)

    if fuse_k is None:
        fuse_k = _prefer_fused_k(C)
    if tile_b is None:
        tile_b = _pick_tile_b(B)
    tile_b = _round_up(tile_b, 8)

    B_pad = tile_b * pl.cdiv(B, tile_b)
    pad = B_pad - B
    if pad:  # pad only when B doesn't divide evenly (no extra cast pass)
        z_src = jnp.pad(z_src, ((0, pad), (0, 0)))
        z_dst = jnp.pad(z_dst, ((0, pad), (0, 0)))
    num_tiles = B_pad // tile_b

    bh = params["b_hid"].reshape(1, C).astype(jnp.float32)
    wf = params["w_final"].reshape(1, C).astype(jnp.float32)
    bf = params["b_final"].reshape(1).astype(jnp.float32)          # SMEM scalar

    z_spec = pl.BlockSpec((tile_b, C), lambda i: (i, 0))
    const = lambda shape: pl.BlockSpec(shape, lambda i: (0, 0))
    smem_scalar = pl.BlockSpec(memory_space=pltpu.MemorySpace.SMEM)

    if fuse_k:
        kernel = _linkpred_kernel_fused
        w_args = (params["w_hid_T_bf16"],)
        w_specs = [const((2 * C, C))]
    else:
        kernel = _linkpred_kernel_split
        w_args = (params["w1_T_bf16"], params["w2_T_bf16"])
        w_specs = [const((C, C)), const((C, C))]

    out = pl.pallas_call(
        kernel,
        grid=(num_tiles,),
        in_specs=[z_spec, z_spec, *w_specs,
                  const((1, C)),      # b_hid row
                  const((1, C)),      # W_final row
                  smem_scalar],       # b_final scalar
        # Lane-dense output: one (1, 1, tile_b) row per grid step.
        out_specs=pl.BlockSpec((1, 1, tile_b), lambda i: (i, 0, 0)),
        out_shape=jax.ShapeDtypeStruct((num_tiles, 1, tile_b), jnp.float32),
        compiler_params=pltpu.CompilerParams(
            dimension_semantics=("parallel",)),
    )(z_src, z_dst, *w_args, bh, wf, bf)

    return out.reshape(-1)[:B].reshape(B, 1)


# --------------------------------------------------------------------------- #
# Deterministic parameter init (matches torch nn.Linear default init, f32)
# --------------------------------------------------------------------------- #
def init_params(key, in_channels):
    def linear(k, fan_in, fan_out):
        kw, kb = jax.random.split(k)
        bound = 1.0 / math.sqrt(fan_in)
        W = jax.random.uniform(kw, (fan_out, fan_in), jnp.float32, -bound, bound)
        b = jax.random.uniform(kb, (fan_out,), jnp.float32, -bound, bound)
        return W, b

    k1, k2 = jax.random.split(key)
    W_hid, b_hid = linear(k1, 2 * in_channels, in_channels)   # [C, 2C], [C]
    W_fin, b_fin = linear(k2, in_channels, 1)                 # [1, C],  [1]

    W_hid_T = W_hid.T                                         # [2C, C] f32
    w_bf16 = W_hid_T.astype(jnp.bfloat16)                     # cast once at init
    return dict(
        # f32 masters (used by the reference)
        w_hid_T=W_hid_T, b_hid=b_hid, w_final=W_fin, b_final=b_fin,
        # bf16 MXU operand copies
        w_hid_T_bf16=w_bf16,
        w1_T_bf16=w_bf16[:in_channels],       # multiplies z_src
        w2_T_bf16=w_bf16[in_channels:],       # multiplies z_dst
    )


# --------------------------------------------------------------------------- #
# Pure-JAX f32 reference (for correctness check)
# --------------------------------------------------------------------------- #
def reference(params, z_src, z_dst):
    cat = jnp.concatenate([z_src, z_dst], axis=-1)
    h = jnp.dot(cat, params["w_hid_T"],
                precision=jax.lax.Precision.HIGHEST) + params["b_hid"]
    h = jnp.maximum(h, 0.0)
    out = jnp.dot(h, params["w_final"].T, precision=jax.lax.Precision.HIGHEST)
    return out + params["b_final"]


if __name__ == "__main__":
    B, C = 512, 128   # small shapes: 512 node-pairs, 128-dim embeddings

    key = jax.random.PRNGKey(0)
    k = jax.random.split(key, 3)
    z_src = jax.random.normal(k[0], (B, C), jnp.float32)
    z_dst = jax.random.normal(k[1], (B, C), jnp.float32)
    params = init_params(k[2], C)

    out = link_predictor(params, z_src, z_dst)
    out = jax.block_until_ready(out)

    ref = reference(params, z_src, z_dst)
    np.testing.assert_allclose(np.asarray(out), np.asarray(ref),
                               rtol=2e-2, atol=2e-2)

    print("KERNEL_OK")
</pallas_src>

<mosaic_0001>
module attributes {stable_mosaic.version = 11 : i64} {
  func.func @_linkpred_kernel_split(%arg0: i32, %arg1: memref<256x128xf32, #tpu.memory_space<vmem>>, %arg2: memref<256x128xf32, #tpu.memory_space<vmem>>, %arg3: memref<128x128xbf16, #tpu.memory_space<vmem>>, %arg4: memref<128x128xbf16, #tpu.memory_space<vmem>>, %arg5: memref<1x128xf32, #tpu.memory_space<vmem>>, %arg6: memref<1x128xf32, #tpu.memory_space<vmem>>, %arg7: memref<1xf32, #tpu.memory_space<smem>>, %arg8: memref<1x1x256xf32, #tpu.memory_space<vmem>>) attributes {dimension_semantics = [#tpu.dimension_semantics<parallel>], iteration_bounds = array<i64: 2>, scalar_prefetch = 0 : i64, scratch_operands = 0 : i64, tpu.core_type = #tpu.core_type<tc>, window_params = [{transform_indices = @transform_0, window_bounds = array<i64: 256, 128>}, {transform_indices = @transform_1, window_bounds = array<i64: 256, 128>}, {pipeline_mode = #tpu.pipeline_mode<synchronous>, transform_indices = @transform_2, window_bounds = array<i64: 128, 128>}, {pipeline_mode = #tpu.pipeline_mode<synchronous>, transform_indices = @transform_3, window_bounds = array<i64: 128, 128>}, {pipeline_mode = #tpu.pipeline_mode<synchronous>, transform_indices = @transform_4, window_bounds = array<i64: 1, 128>}, {pipeline_mode = #tpu.pipeline_mode<synchronous>, transform_indices = @transform_5, window_bounds = array<i64: 1, 128>}, {transform_indices = @transform_6, window_bounds = array<i64: 1>}, {transform_indices = @transform_7, window_bounds = array<i64: 1, 1, 256>}]} {
    %c0 = arith.constant 0 : index
    %c0_0 = arith.constant 0 : index
    %0 = vector.load %arg1[%c0, %c0_0] : memref<256x128xf32, #tpu.memory_space<vmem>>, vector<256x128xf32>
    %1 = arith.truncf %0 : vector<256x128xf32> to vector<256x128xbf16>
    %c0_1 = arith.constant 0 : index
    %c0_2 = arith.constant 0 : index
    %2 = vector.load %arg2[%c0_1, %c0_2] : memref<256x128xf32, #tpu.memory_space<vmem>>, vector<256x128xf32>
    %3 = arith.truncf %2 : vector<256x128xf32> to vector<256x128xbf16>
    %c0_3 = arith.constant 0 : index
    %c0_4 = arith.constant 0 : index
    %4 = vector.load %arg3[%c0_3, %c0_4] : memref<128x128xbf16, #tpu.memory_space<vmem>>, vector<128x128xbf16>
    %cst = arith.constant dense<0.000000e+00> : vector<256x128xf32>
    %5 = tpu.matmul %1, %4, %cst {dimension_numbers = #tpu.dot_dimension_numbers<[1], [0], [0], [1], [0, 0, 1, 1], [], []>} : vector<256x128xbf16>, vector<128x128xbf16>, vector<256x128xf32> -> vector<256x128xf32>
    %c0_5 = arith.constant 0 : index
    %c0_6 = arith.constant 0 : index
    %6 = vector.load %arg4[%c0_5, %c0_6] : memref<128x128xbf16, #tpu.memory_space<vmem>>, vector<128x128xbf16>
    %cst_7 = arith.constant dense<0.000000e+00> : vector<256x128xf32>
    %7 = tpu.matmul %3, %6, %cst_7 {dimension_numbers = #tpu.dot_dimension_numbers<[1], [0], [0], [1], [0, 0, 1, 1], [], []>} : vector<256x128xbf16>, vector<128x128xbf16>, vector<256x128xf32> -> vector<256x128xf32>
    %8 = arith.addf %5, %7 : vector<256x128xf32>
    %c0_8 = arith.constant 0 : index
    %c0_9 = arith.constant 0 : index
    %9 = vector.load %arg5[%c0_8, %c0_9] : memref<1x128xf32, #tpu.memory_space<vmem>>, vector<1x128xf32>
    %10 = vector.broadcast %9 : vector<1x128xf32> to vector<256x128xf32>
    %11 = arith.addf %8, %10 : vector<256x128xf32>
    %cst_10 = arith.constant 0.000000e+00 : f32
    %12 = vector.broadcast %cst_10 : f32 to vector<256x128xf32>
    %13 = arith.maximumf %11, %12 : vector<256x128xf32>
    %c0_11 = arith.constant 0 : index
    %c0_12 = arith.constant 0 : index
    %14 = vector.load %arg6[%c0_11, %c0_12] : memref<1x128xf32, #tpu.memory_space<vmem>>, vector<1x128xf32>
    %15 = vector.broadcast %14 : vector<1x128xf32> to vector<256x128xf32>
    %16 = arith.mulf %13, %15 : vector<256x128xf32>
    %cst_13 = arith.constant dense<0.000000e+00> : vector<256xf32>
    %17 = vector.multi_reduction <add>, %16, %cst_13 [1] : vector<256x128xf32> to vector<256xf32>
    %18 = vector.shape_cast %17 : vector<256xf32> to vector<1x1x256xf32>
    %c0_14 = arith.constant 0 : index
    %19 = memref.load %arg7[%c0_14] : memref<1xf32, #tpu.memory_space<smem>>
    %20 = vector.broadcast %19 : f32 to vector<1x1x256xf32>
    %21 = arith.addf %18, %20 : vector<1x1x256xf32>
    %c0_15 = arith.constant 0 : index
    %c0_16 = arith.constant 0 : index
    %c0_17 = arith.constant 0 : index
    %22 = vector.load %arg8[%c0_15, %c0_16, %c0_17] : memref<1x1x256xf32, #tpu.memory_space<vmem>>, vector<1x1x256xf32>
    tpu.vector_store %arg8[%c0_15, %c0_16, %c0_17], %21 {strides = array<i32>} : memref<1x1x256xf32, #tpu.memory_space<vmem>>, vector<1x1x256xf32>,
    return
  }
  func.func @transform_0(%arg0: i32) -> (i32, i32) {
    %c0_i32 = arith.constant 0 : i32
    %c0_i32_0 = arith.constant 0 : i32
    return %arg0, %c0_i32 : i32, i32
  }
  func.func @transform_1(%arg0: i32) -> (i32, i32) {
    %c0_i32 = arith.constant 0 : i32
    %c0_i32_0 = arith.constant 0 : i32
    return %arg0, %c0_i32 : i32, i32
  }
  func.func @transform_2(%arg0: i32) -> (i32, i32) {
    %c0_i32 = arith.constant 0 : i32
    %c0_i32_0 = arith.constant 0 : i32
    %c0_i32_1 = arith.constant 0 : i32
    return %c0_i32, %c0_i32_0 : i32, i32
  }
  func.func @transform_3(%arg0: i32) -> (i32, i32) {
    %c0_i32 = arith.constant 0 : i32
    %c0_i32_0 = arith.constant 0 : i32
    %c0_i32_1 = arith.constant 0 : i32
    return %c0_i32, %c0_i32_0 : i32, i32
  }
  func.func @transform_4(%arg0: i32) -> (i32, i32) {
    %c0_i32 = arith.constant 0 : i32
    %c0_i32_0 = arith.constant 0 : i32
    %c0_i32_1 = arith.constant 0 : i32
    return %c0_i32, %c0_i32_0 : i32, i32
  }
  func.func @transform_5(%arg0: i32) -> (i32, i32) {
    %c0_i32 = arith.constant 0 : i32
    %c0_i32_0 = arith.constant 0 : i32
    %c0_i32_1 = arith.constant 0 : i32
    return %c0_i32, %c0_i32_0 : i32, i32
  }
  func.func @transform_6(%arg0: i32) -> i32 {
    %c0_i32 = arith.constant 0 : i32
    %c0_i32_0 = arith.constant 0 : i32
    return %c0_i32 : i32
  }
  func.func @transform_7(%arg0: i32) -> (i32, i32, i32) {
    %c0_i32 = arith.constant 0 : i32
    %c0_i32_0 = arith.constant 0 : i32
    %c0_i32_1 = arith.constant 0 : i32
    return %arg0, %c0_i32, %c0_i32_0 : i32, i32, i32
  }
}

</mosaic_0001>

<bundles_post_ra>
// kernel: tpu_custom_call.1
= control target key start
LH: loop header
LB: loop body
LE: loop exit
PB: predicated region body
PF: predicated region fallthrough
CT: control target
= control target key end

     0   :  { %s6088_s0 = inlined_call_operand.hbm [shape: f32[512,128], index: 0, kind: input, shape index: {}]   ;;  %s6089_s1 = inlined_call_operand.hbm [shape: f32[512,128], index: 1, kind: input, shape index: {}]   ;;  %s6090_s2 = inlined_call_operand.hbm [shape: bf16[128,128], index: 2, kind: input, shape index: {}]   ;;  %s6091_s3 = inlined_call_operand.hbm [shape: bf16[128,128], index: 3, kind: input, shape index: {}]   ;;  %s6092_s4 = inlined_call_operand.vmem [shape: f32[1,128], index: 4, kind: input, shape index: {}]   ;;  %s6093_s5 = inlined_call_operand.vmem [shape: f32[1,128], index: 5, kind: input, shape index: {}]   ;;  %s6094_s6 = inlined_call_operand.<no memory space> [shape: f32[1], index: 6, kind: input, shape index: {}]   ;;  %s6095_s7 = inlined_call_operand.hbm [shape: f32[2,1,256], index: 7, kind: output, shape index: {}]  }
   0x1   :  { %6099 = sst [smem:[#allocation17_spill]] %s6088_s0 }
   0x2   :  { %6100 = sst [smem:[#allocation18_spill]] %s6090_s2 }
   0x3   :  { %6101 = sst [smem:[#allocation19_spill]] %s6091_s3 }
   0x4   :  { %12 = sst [smem:[#allocation2]] %s6094_s6 }
   0x5   :  { %13 = vsyncpa [#allocation4], 0 }
   0x6   :  { %15 = vsyncpa [#allocation4 + $0x1], 0 }
   0x7   :  { %16 = vsyncpa [#allocation7], 0 }
   0x8   :  { %18 = vsyncpa [#allocation7 + $0x1], 0 }
   0x9   :  { %19 = vsyncpa [#allocation10], 0 }
   0xa   :  { %20 = vsyncpa [#allocation5], 0 }
   0xb   :  { %22 = vsyncpa [#allocation5 + $0x1], 0  ;;  %s4747_s26 = smov 0   ;;  %s4749_s27 = smov 0  }
   0xc   :  { %s4751_s28 = smov 0   ;;  %s4753_s29 = smov 0  }
   0xd LB: > { %s4768_s6 = sadd.s32 4294967295, %s4691_s29   ;;  %s4182_s30 = sadd.s32 4294967294, %s4691_s29   ;;  %s4691_s29 = sphi %s4753_s29, %s6123_s29   ;;  %s4687_s28 = sphi %s4751_s28, %s6122_s28   ;;  %s4683_s27 = sphi %s4749_s27, %s6121_s27   ;;  %s4679_s26 = sphi %s4747_s26, %s6120_s26  }
   0xe   : > { %p48_p0 = scmp.ne.s32.totalorder %s4683_s27, %s4679_s26  ;;  %p6096_p1 = scmp.eq.s32.totalorder %s4768_s6, 0 }
   0xf   : > { %p209_p3 = scmp.eq.s32.totalorder %s4182_s30, 1  ;;  %p4183_p5 = scmp.ge.s32.totalorder %s4691_s29, 1 }
  0x10   : > { %p4777_p4 = por %p6096_p1, %p48_p0  ;;  %p216_p7 = scmp.lt.s32.totalorder %s4691_s29, 3 }
  0x11   : > { %p4782_p6 = por %p209_p3, %p48_p0  ;;  %s4693_s11 = smov [#allocation8]  }
  0x12   : > { %s6102_s8 = scalar_select %p4777_p4, 1, 0 }
  0x13   : > { %s6103_s9 = scalar_select %p4782_p6, 1, 0 }
  0x14   : > { %p4787_p8 = pnand %p4183_p5, %p216_p7  ;;  %s228_s12 = sshll.u32 %s4693_s11, 4  ;;  %s4791_s12 = int_to_ptr.vmem [resolvable:$true] %s228_s12 }
  0x15   : > { %s4694_s14 = smov [#allocation9]   ;;  %s6106_s2 = sld [smem:[#allocation18_spill]] }
  0x16   : > { %p4415_p9 = pneg %p4787_p8  ;;  %s241_s15 = sshll.u32 %s4694_s14, 4  ;;  %s4802_s15 = int_to_ptr.vmem [resolvable:$true] %s241_s15 }
  0x18   : > { %p4798_p11 = pnand %p4415_p9, %p6096_p1 }
  0x1a   : > { %p4499_p13 = pneg %p4798_p11 }
  0x1b   : > { %s4497_s18 = scalar_lea.hbm %s6106_s2, 1024 }
  0x1c   : > { %p4498_p12 = scmp.ne.s32.totalorder %s6106_s2, %s4497_s18  ;;  %p4504_p5 = scmp.lt.u32.totalorder %s4497_s18, %s6106_s2 }
  0x1e   : > { %p4500_p0 = pnand %p4499_p13, %p4498_p12 }
  0x20   : > { %p4501_p3 = pneg %p4500_p0 }
  0x22   : > { %p4506_p7 = pnand %p4504_p5, %p4501_p3 }
  0x24   : > { %4509 = shalt.err (!%p4506_p7)
}
  0x25   : > { %s4510_s23 = scalar_lea.vmem %s4791_s12, 1024  ;;  %p4518_p2 = scmp.lt.s32.totalorder %s4791_s12, %s4791_s12 }
  0x26   : > { %p4511_p9 = scmp.ne.s32.totalorder %s4791_s12, %s4510_s23  ;;  %p4519_p12 = scmp.lt.s32.totalorder %s4510_s23, %s4510_s23 }
  0x28   : > { %p4513_p10 = pnand %p4511_p9, %p4499_p13  ;;  %p4520_p0 = por %p4519_p12, %p4518_p2 }
  0x2a   : > { %p4514_p1 = pneg %p4513_p10 }
  0x2c   : > { %p4521_p6 = pnand %p4520_p0, %p4514_p1 }
  0x2e   : > { %4524 = shalt.err (!%p4521_p6)
}
  0x2f   : > { %s4695_s24 = smov 64   ;;  %s4696_s25 = smov 4  }
  0x30   : > { %4418 = dma.hbm_to_vmem [thread:$0]  (!%p4798_p11), %s6106_s2, 1024, %s4791_s12, [#allocation7], %s4695_s24, %s4695_s24, %s4696_s25  }
  0x31   : > { %s6107_s3 = sld [smem:[#allocation19_spill]] }
  0x37   : > { %s4525_s17 = scalar_lea.hbm %s6107_s3, 1024 }
  0x38   : > { %p4526_p2 = scmp.ne.s32.totalorder %s6107_s3, %s4525_s17  ;;  %p4532_p10 = scmp.lt.u32.totalorder %s4525_s17, %s6107_s3 }
  0x3a   : > { %p4528_p1 = pnand %p4526_p2, %p4499_p13 }
  0x3c   : > { %p4529_p6 = pneg %p4528_p1 }
  0x3e   : > { %p4534_p3 = pnand %p4532_p10, %p4529_p6 }
  0x40   : > { %4537 = shalt.err (!%p4534_p3)
}
  0x41   : > { %s4538_s12 = scalar_lea.vmem %s4802_s15, 1024  ;;  %p4546_p12 = scmp.lt.s32.totalorder %s4802_s15, %s4802_s15 }
  0x42   : > { %p4539_p5 = scmp.ne.s32.totalorder %s4802_s15, %s4538_s12  ;;  %p4547_p0 = scmp.lt.s32.totalorder %s4538_s12, %s4538_s12 }
  0x44   : > { %p4541_p7 = pnand %p4539_p5, %p4499_p13  ;;  %p4548_p2 = por %p4547_p0, %p4546_p12 }
  0x46   : > { %p4542_p9 = pneg %p4541_p7 }
  0x48   : > { %p4549_p1 = pnand %p4548_p2, %p4542_p9 }
  0x4a   : > { %4552 = shalt.err (!%p4549_p1)
}
  0x4b   : > { %4421 = dma.hbm_to_vmem [thread:$0]  (!%p4798_p11), %s6107_s3, 1024, %s4802_s15, [#allocation10], %s4695_s24, %s4695_s24, %s4696_s25  }
  0x4c   : > { %s4857_s30 = sadd.s32 1, %s4691_s29   ;;  %s35_s13 = sadd.s32 1, %s4687_s28 }
  0x4d   : > { %s32_s11 = ssub.s32 %s4691_s29, %s4857_s30  ;;  %p42_p13 = scmp.ne.s32.totalorder %s4687_s28, %s4683_s27 }
  0x4e   : > { %p33_p6 = scmp.eq.s32.totalorder %s32_s11, 0  ;;  %p43_p10 = scmp.eq.s32.totalorder %s4691_s29, 0 }
  0x4f   : > { %p6108_p3 = scmp.eq.s32.totalorder %s4768_s6, 1  ;;  %p4435_p7 = scmp.lt.s32.totalorder %s4691_s29, 2 }
  0x50   : > { %s4873_s16 = scalar_select %p33_p6, %s4687_s28, %s35_s13  }
  0x51   : > { %p4867_p5 = por %p6108_p3, %p42_p13  ;;  %p44_p9 = por %p43_p10, %p42_p13 }
  0x52   : > { %s264_s17 = sand.u32 1, %s4687_s28   ;;  %s4222_s15 = sshll.u32 %s4691_s29, 12 }
  0x53   : > { %s6109_s14 = scalar_select %p4867_p5, 1, 0 }
  0x54   : > { %s4876_s18 = sshll.u32 %s264_s17, 8  ;;  %s6110_s0 = sld [smem:[#allocation17_spill]] }
  0x55   : > { %s268_s20 = scalar_lea.vmem [#allocation3], %s4876_s18  ;;  %p4889_p11 = pnand %p4435_p7, %p44_p9 }
  0x56   : > { %s275_s21 = sshll.u32 %s268_s20, 4  ;;  %s4893_s22 = scalar_lea.sflag [#allocation4], %s264_s17  ;;  %s4887_s21 = int_to_ptr.vmem [resolvable:$true] %s275_s21 }
  0x57   : > { %p4555_p0 = pneg %p4889_p11 }
  0x5a   : > { %s4884_s19 = scalar_lea.hbm %s6110_s0, %s4222_s15  ;;  %s4558_s24 = scalar_lea.hbm %s6110_s0, 8192 }
  0x5b   : > { %s4553_s23 = scalar_lea.hbm %s4884_s19, 4096  ;;  %p4559_p13 = scmp.lt.u32.totalorder %s4884_s19, %s6110_s0 }
  0x5c   : > { %p4554_p12 = scmp.ne.s32.totalorder %s4884_s19, %s4553_s23  ;;  %p4560_p6 = scmp.lt.u32.totalorder %s4558_s24, %s4553_s23 }
  0x5d   : > { %p4562_p3 = scmp.lt.u32.totalorder %s4553_s23, %s4884_s19 }
  0x5e   : > { %p4556_p2 = pnand %p4555_p0, %p4554_p12  ;;  %p4561_p10 = por %p4560_p6, %p4559_p13 }
  0x60   : > { %p4557_p1 = pneg %p4556_p2  ;;  %p4563_p7 = por %p4562_p3, %p4561_p10 }
  0x62   : > { %p4564_p9 = pnand %p4563_p7, %p4557_p1 }
  0x64   : > { %4567 = shalt.err (!%p4564_p9)
}
  0x65   : > { %s4568_s17 = scalar_lea.vmem %s4887_s21, 4096  ;;  %s4697_s13 = smov [#allocation3]  }
  0x66   : > { %p4569_p12 = scmp.ne.s32.totalorder %s4887_s21, %s4568_s17  ;;  %s4573_s11 = sshll.u32 %s4697_s13, 4  ;;  %s4574_s11 = int_to_ptr.vmem [resolvable:$false] %s4573_s11 }
  0x67   : > { %s4575_s25 = scalar_lea.vmem %s4574_s11, 8192  ;;  %p4576_p4 = scmp.lt.s32.totalorder %s4887_s21, %s4574_s11 }
  0x68   : > { %p4571_p2 = pnand %p4569_p12, %p4555_p0  ;;  %p4577_p13 = scmp.lt.s32.totalorder %s4575_s25, %s4568_s17 }
  0x6a   : > { %p4572_p5 = pneg %p4571_p2  ;;  %p4578_p6 = por %p4577_p13, %p4576_p4 }
  0x6c   : > { %p4579_p10 = pnand %p4578_p6, %p4572_p5 }
  0x6e   : > { %4582 = shalt.err (!%p4579_p10)
}
  0x6f   : > { %s4698_s23 = smov 128   ;;  %s4699_s24 = smov 8  }
  0x70   : > { %4425 = dma.hbm_to_vmem [thread:$0]  (!%p4889_p11), %s4884_s19, 4096, %s4887_s21, %s4893_s22, %s4698_s23, %s4698_s23, %s4699_s24  }
  0x71   : > { %s4929_s13 = scalar_lea.hbm %s6089_s1, %s4222_s15  ;;  %s289_s11 = scalar_lea.vmem [#allocation6], %s4876_s18 }
  0x72   : > { %s296_s25 = sshll.u32 %s289_s11, 4  ;;  %s285_s0 = sand.u32 1, %s4691_s29   ;;  %s4932_s25 = int_to_ptr.vmem [resolvable:$true] %s296_s25 }
  0x73   : > { %s4935_s2 = scalar_lea.sflag [#allocation7], %s285_s0  ;;  %s4583_s3 = scalar_lea.hbm %s4929_s13, 4096 }
  0x74   : > { %p4584_p4 = scmp.ne.s32.totalorder %s4929_s13, %s4583_s3  ;;  %s4588_s21 = scalar_lea.hbm %s6089_s1, 8192 }
  0x75   : > { %p4589_p3 = scmp.lt.u32.totalorder %s4929_s13, %s6089_s1  ;;  %p4590_p7 = scmp.lt.u32.totalorder %s4588_s21, %s4583_s3 }
  0x76   : > { %p4586_p5 = pnand %p4584_p4, %p4555_p0  ;;  %p4592_p12 = scmp.lt.u32.totalorder %s4583_s3, %s4929_s13 }
  0x77   : > { %p4591_p9 = por %p4590_p7, %p4589_p3 }
  0x78   : > { %p4587_p1 = pneg %p4586_p5 }
  0x79   : > { %p4593_p2 = por %p4592_p12, %p4591_p9 }
  0x7b   : > { %p4594_p13 = pnand %p4593_p2, %p4587_p1 }
  0x7d   : > { %4597 = shalt.err (!%p4594_p13)
}
  0x7e   : > { %s4598_s0 = scalar_lea.vmem %s4932_s25, 4096  ;;  %s4700_s18 = smov [#allocation6]  }
  0x7f   : > { %p4599_p6 = scmp.ne.s32.totalorder %s4932_s25, %s4598_s0  ;;  %s4603_s17 = sshll.u32 %s4700_s18, 4  ;;  %s4604_s17 = int_to_ptr.vmem [resolvable:$false] %s4603_s17 }
  0x80   : > { %s4605_s11 = scalar_lea.vmem %s4604_s17, 8192  ;;  %p4606_p5 = scmp.lt.s32.totalorder %s4932_s25, %s4604_s17 }
  0x81   : > { %p4601_p10 = pnand %p4599_p6, %p4555_p0  ;;  %p4607_p3 = scmp.lt.s32.totalorder %s4605_s11, %s4598_s0 }
  0x83   : > { %p4602_p4 = pneg %p4601_p10  ;;  %p4608_p7 = por %p4607_p3, %p4606_p5 }
  0x85   : > { %p4609_p9 = pnand %p4608_p7, %p4602_p4 }
  0x87   : > { %4612 = shalt.err (!%p4609_p9)
}
  0x88   : > { %4428 = dma.hbm_to_vmem [thread:$0]  (!%p4889_p11), %s4929_s13, 4096, %s4932_s25, %s4935_s2, %s4698_s23, %s4698_s23, %s4699_s24  }
  0x89   : > { %308 = sbr.rel (%p4787_p8) target bundleno = 886 (0x376), region = 48  ;;  %s4967_s3 = sand.u32 (!%p4787_p8), 1, %s4683_s27  }
  0x8a   : > { %s4194_s19 = sshll.u32 (!%p4787_p8), %s4967_s3, 8  ;;  %s311_s15 = scalar_lea.sflag (!%p4787_p8), [#allocation4], %s4967_s3 }
  0x8b   : > { %s4971_s21 = scalar_lea.vmem (!%p4787_p8), [#allocation3], %s4194_s19  ;;  %p6112_p0 = scmp.ne.s32.totalorder (!%p4787_p8), %s6102_s8, 0 }
  0x90   : > { %4658 = dma.done.wait (%p6112_p0), %s311_s15, 4096  }
  0x91   : > { %4660 = vsyncadd (%p6112_p0), %s311_s15, 4294963200  ;;  %s319_s2 = sand.u32 1, %s4768_s6   ;;  %s4978_s12 = scalar_lea.vmem [#allocation6], %s4194_s19 }
  0x92   : > { %s320_s10 = scalar_lea.sflag [#allocation7], %s319_s2 }
  0x93   : > { %4662 = dma.done.wait (%p6112_p0), %s320_s10, 4096  }
  0x94   : > { %4664 = vsyncadd (%p6112_p0), %s320_s10, 4294963200  ;;  %p6113_p8 = scmp.eq.s32.totalorder %s4768_s6, 0 }
  0x96   : > { %4666 = dma.done.wait (%p6113_p8), [#allocation7], 1024   ;;  %p6114_p11 = pmov %p6113_p8 }
  0x97   : > { %p6115_p1 = pmov %p6113_p8 }
  0x98   : > { %4668 = vsyncadd (%p6114_p11), [#allocation7], 4294966272 }
  0x99   : > { %4670 = dma.done.wait (%p6115_p1), [#allocation10], 1024   ;;  %p6116_p12 = pmov %p6115_p1 }
  0x9a   : > { %v4481_v0 = vld [vmem:[#allocation9] sm:$0xff]   ;;  %v4483_v2 = vld [vmem:[#allocation9 + $0x8] sm:$0xff]   ;;  %v4485_v4 = vld [vmem:[#allocation9 + $0x10] sm:$0xff]   ;;  %s1090_s25 = sld [smem:[#allocation2]]  ;;  %vm3855_vm0 = vcmask 130112   ;;  %vm3862_vm1 = vcmask 195712  }
  0x9b   : > { %4672 = vsyncadd (%p6116_p12), [#allocation10], 4294966272  ;;  %v4482_v1 = vld [vmem:[#allocation8] sm:$0xff]   ;;  %4273 = vmatprep.subr.bf16.mxu1 %v4481_v0  ;;  %v4484_v3 = vld [vmem:[#allocation8 + $0x8] sm:$0xff]   ;;  %vm3869_vm2 = vcmask 261312   ;;  %vm3876_vm3 = vcmask 326912  }
  0x9c   : > { %4321 = vmatprep.subr.bf16.mxu0 %v4482_v1  ;;  %4274 = vmatpush3.bf16.msra.mxu1 %v4481_v0  ;;  %v4486_v5 = vld [vmem:[#allocation8 + $0x10] sm:$0xff]   ;;  %v4487_v6 = vld [vmem:[#allocation9 + $0x18] sm:$0xff]   ;;  %v4489_v8 = vld [vmem:[#allocation9 + $0x20] sm:$0xff]   ;;  %vm3883_vm4 = vcmask 392512   ;;  %vm3890_vm5 = vcmask 458112   ;;  %vm3897_vm6 = vcmask 523712  }
  0x9d   : > { %4322 = vmatpush3.bf16.msra.mxu0 %v4482_v1  ;;  %4275 = vmatprep.subr.bf16.mxu1 %v4483_v2  ;;  %v4488_v7 = vld [vmem:[#allocation8 + $0x18] sm:$0xff]   ;;  %v4490_v9 = vld [vmem:[#allocation8 + $0x20] sm:$0xff]   ;;  %v4491_v10 = vld [vmem:[#allocation9 + $0x28] sm:$0xff]   ;;  %vm3904_vm7 = vcmask 589312   ;;  %vm3911_vm8 = vcmask 654912   ;;  %vm3918_vm9 = vcmask 720512  }
  0x9e   : > { %4323 = vmatprep.subr.bf16.mxu0 %v4484_v3  ;;  %v418_v11 = vld [vmem:[%s4978_s12] sm:$0xff]  ;;  %v419_v12 = vld [vmem:[%s4978_s12 + $0x8] sm:$0xff]  ;;  %v4493_v18 = vld [vmem:[#allocation9 + $0x30] sm:$0xff]   ;;  %vm3925_vm10 = vcmask 786112   ;;  %vm3932_vm11 = vcmask 851712   ;;  %vm3939_vm12 = vcmask 917312  }
  0x9f   : > { %v370_v13 = vld [vmem:[%s4971_s21] sm:$0xff]  ;;  %v4492_v14 = vld [vmem:[#allocation8 + $0x28] sm:$0xff]   ;;  %v450_v15 = vpack.c.bf16 %v419_v12, %v418_v11  ;;  %v4494_v19 = vld [vmem:[#allocation8 + $0x30] sm:$0xff]   ;;  %vm3946_vm13 = vcmask 982912   ;;  %s4198_s22 = sshll.u32 %s4967_s3, 1  ;;  %vm3953_vm14 = vcmask 1048512  }
  0xa0   : > { %4276 = vmatpush3.bf16.msra.mxu1 %v4483_v2  ;;  %v371_v16 = vld [vmem:[%s4971_s21 + $0x8] sm:$0xff]  ;;  %v4495_v20 = vld [vmem:[#allocation9 + $0x38] sm:$0xff]   ;;  %v420_v22 = vld [vmem:[%s4978_s12 + $0x10] sm:$0xff]  ;;  %s4224_s20 = sshll.u32 %s4768_s6, 5  ;;  %s366_s0 = scalar_lea.vmem [#allocation11], %s4198_s22 }
  0xa1   : > { %4324 = vmatpush3.bf16.msra.mxu0 %v4484_v3  ;;  %4277 = vmatprep.subr.bf16.mxu1 %v4485_v4  ;;  %v402_v17 = vpack.c.bf16 %v371_v16, %v370_v13  ;;  %v4496_v21 = vld [vmem:[#allocation8 + $0x38] sm:$0xff]   ;;  %v372_v24 = vld [vmem:[%s4971_s21 + $0x10] sm:$0xff]  ;;  %v422_v26 = vld [vmem:[%s4978_s12 + $0x20] sm:$0xff]  ;;  %s4070_s18 = sshll.u32 %s366_s0, 4  ;;  %s6044_s19 = scalar_lea.hbm %s6095_s7, %s4224_s20  ;;  %s6046_s18 = int_to_ptr.vmem [resolvable:$true] %s4070_s18 }
  0xa2   : > { %4325 = vmatprep.subr.bf16.mxu0 %v4486_v5  ;;  %4289 = vmatprep.mubr.bf16.mxu1 %v450_v15  ;;  %v421_v23 = vld [vmem:[%s4978_s12 + $0x18] sm:$0xff]  ;;  %v423_v27 = vld [vmem:[%s4978_s12 + $0x28] sm:$0xff]  ;;  %v374_v28 = vld [vmem:[%s4971_s21 + $0x20] sm:$0xff]  ;;  %s4056_s6 = scalar_lea.sflag [#allocation5], %s4967_s3  ;;  %s4613_s15 = scalar_lea.vmem %s6046_s18, 32 }
  0xa3   : > { %4337 = vmatprep.mubr.bf16.mxu0 %v402_v17  ;;  %v373_v25 = vld [vmem:[%s4971_s21 + $0x18] sm:$0xff]  ;;  %v375_v29 = vld [vmem:[%s4971_s21 + $0x28] sm:$0xff]  ;;  %v451_v30 = vpack.c.bf16 %v421_v23, %v420_v22  ;;  %v452_v32 = vpack.c.bf16 %v423_v27, %v422_v26  ;;  %v424_v34 = vld [vmem:[%s4978_s12 + $0x30] sm:$0xff]  ;;  %p4614_p2 = scmp.ne.s32.totalorder %s6046_s18, %s4613_s15  ;;  %p6117_p13 = scmp.ne.s32.totalorder %s6109_s14, 0 }
  0xa4   : > { %4278 = vmatpush3.bf16.msra.mxu1 %v4485_v4  ;;  %v403_v31 = vpack.c.bf16 %v373_v25, %v372_v24  ;;  %v404_v33 = vpack.c.bf16 %v375_v29, %v374_v28  ;;  %v425_v35 = vld [vmem:[%s4978_s12 + $0x38] sm:$0xff]  ;;  %v376_v36 = vld [vmem:[%s4971_s21 + $0x30] sm:$0xff]  ;;  %v426_v38 = vld [vmem:[%s4978_s12 + $0x40] sm:$0xff] }
  0xa5   : > { %4326 = vmatpush3.bf16.msra.mxu0 %v4486_v5  ;;  %4279 = vmatprep.subr.bf16.mxu1 %v4487_v6  ;;  %v377_v37 = vld [vmem:[%s4971_s21 + $0x38] sm:$0xff]  ;;  %v427_v39 = vld [vmem:[%s4978_s12 + $0x48] sm:$0xff]  ;;  %v378_v40 = vld [vmem:[%s4971_s21 + $0x40] sm:$0xff]  ;;  %v453_v42 = vpack.c.bf16 %v425_v35, %v424_v34  ;;  %p4615_p6 = pnand %p4614_p2, %p6117_p13 }
  0xa6   : > { %4327 = vmatprep.subr.bf16.mxu0 %v4488_v7  ;;  %v379_v41 = vld [vmem:[%s4971_s21 + $0x48] sm:$0xff]  ;;  %v405_v43 = vpack.c.bf16 %v377_v37, %v376_v36  ;;  %v454_v44 = vpack.c.bf16 %v427_v39, %v426_v38  ;;  %v428_v46 = vld [vmem:[%s4978_s12 + $0x50] sm:$0xff]  ;;  %v429_v47 = vld [vmem:[%s4978_s12 + $0x58] sm:$0xff] }
  0xa7   : > { %v406_v45 = vpack.c.bf16 %v379_v41, %v378_v40  ;;  %v380_v48 = vld [vmem:[%s4971_s21 + $0x50] sm:$0xff]  ;;  %v381_v49 = vld [vmem:[%s4971_s21 + $0x58] sm:$0xff]  ;;  %v430_v50 = vld [vmem:[%s4978_s12 + $0x60] sm:$0xff]  ;;  %v455_v54 = vpack.c.bf16 %v429_v47, %v428_v46  ;;  %p4616_p10 = pneg %p4615_p6 }
  0xa8   : > { %4280 = vmatpush3.bf16.msra.mxu1 %v4487_v6  ;;  %v431_v51 = vld [vmem:[%s4978_s12 + $0x68] sm:$0xff]  ;;  %v382_v52 = vld [vmem:[%s4971_s21 + $0x60] sm:$0xff]  ;;  %v407_v55 = vpack.c.bf16 %v381_v49, %v380_v48  ;;  %v432_v58 = vld [vmem:[%s4978_s12 + $0x70] sm:$0xff] }
  0xa9   : > { %4328 = vmatpush3.bf16.msra.mxu0 %v4488_v7  ;;  %4281 = vmatprep.subr.bf16.mxu1 %v4489_v8  ;;  %v383_v53 = vld [vmem:[%s4971_s21 + $0x68] sm:$0xff]  ;;  %v456_v56 = vpack.c.bf16 %v431_v51, %v430_v50  ;;  %v433_v59 = vld [vmem:[%s4978_s12 + $0x78] sm:$0xff]  ;;  %v384_v60 = vld [vmem:[%s4971_s21 + $0x70] sm:$0xff] }
  0xaa   : > { %4329 = vmatprep.subr.bf16.mxu0 %v4490_v9  ;;  %v408_v57 = vpack.c.bf16 %v383_v53, %v382_v52  ;;  %v385_v61 = vld [vmem:[%s4971_s21 + $0x78] sm:$0xff]  ;;  %v434_v62 = vld [vmem:[%s4978_s12 + $0x80] sm:$0xff]  ;;  %v435_v63 = vld [vmem:[%s4978_s12 + $0x88] sm:$0xff]  ;;  %v457_v2 = vpack.c.bf16 %v433_v59, %v432_v58 }
  0xab   : > { %v386_v0 = vld [vmem:[%s4971_s21 + $0x80] sm:$0xff]  ;;  %v387_v1 = vld [vmem:[%s4971_s21 + $0x88] sm:$0xff]  ;;  %v409_v3 = vpack.c.bf16 %v385_v61, %v384_v60  ;;  %v458_v4 = vpack.c.bf16 %v435_v63, %v434_v62  ;;  %v436_v6 = vld [vmem:[%s4978_s12 + $0x90] sm:$0xff] }
  0xac   : > { %4282 = vmatpush3.bf16.msra.mxu1 %v4489_v8  ;;  %v410_v5 = vpack.c.bf16 %v387_v1, %v386_v0  ;;  %v437_v7 = vld [vmem:[%s4978_s12 + $0x98] sm:$0xff]  ;;  %v388_v8 = vld [vmem:[%s4971_s21 + $0x90] sm:$0xff]  ;;  %v439_v11 = vld [vmem:[%s4978_s12 + $0xa8] sm:$0xff] }
  0xad   : > { %4330 = vmatpush3.bf16.msra.mxu0 %v4490_v9  ;;  %4283 = vmatprep.subr.bf16.mxu1 %v4491_v10  ;;  %v389_v9 = vld [vmem:[%s4971_s21 + $0x98] sm:$0xff]  ;;  %v390_v12 = vld [vmem:[%s4971_s21 + $0xa0] sm:$0xff]  ;;  %v391_v13 = vld [vmem:[%s4971_s21 + $0xa8] sm:$0xff] }
  0xae   : > { %4331 = vmatprep.subr.bf16.mxu0 %v4492_v14  ;;  %v411_v15 = vpack.c.bf16 %v389_v9, %v388_v8  ;;  %v412_v17 = vpack.c.bf16 %v391_v13, %v390_v12  ;;  %v442_v22 = vld [vmem:[%s4978_s12 + $0xc0] sm:$0xff]  ;;  %v443_v23 = vld [vmem:[%s4978_s12 + $0xc8] sm:$0xff] }
  0xaf   : > { %v394_v24 = vld [vmem:[%s4971_s21 + $0xc0] sm:$0xff]  ;;  %v395_v25 = vld [vmem:[%s4971_s21 + $0xc8] sm:$0xff]  ;;  %v462_v28 = vpack.c.bf16 %v443_v23, %v442_v22 }
  0xb0   : > { %4284 = vmatpush3.bf16.msra.mxu1 %v4491_v10  ;;  %v438_v10 = vld [vmem:[%s4978_s12 + $0xa0] sm:$0xff]  ;;  %v414_v29 = vpack.c.bf16 %v395_v25, %v394_v24  ;;  %v447_v35 = vld [vmem:[%s4978_s12 + $0xe8] sm:$0xff] }
  0xb1   : > { %4332 = vmatpush3.bf16.msra.mxu0 %v4492_v14  ;;  %4285 = vmatprep.subr.bf16.mxu1 %v4493_v18  ;;  %v459_v14 = vpack.c.bf16 %v437_v7, %v436_v6  ;;  %v460_v16 = vpack.c.bf16 %v439_v11, %v438_v10  ;;  %v446_v34 = vld [vmem:[%s4978_s12 + $0xe0] sm:$0xff]  ;;  %v399_v37 = vld [vmem:[%s4971_s21 + $0xe8] sm:$0xff] }
  0xb2   : > { %4333 = vmatprep.subr.bf16.mxu0 %v4494_v19  ;;  %v398_v36 = vld [vmem:[%s4971_s21 + $0xe0] sm:$0xff]  ;;  %v464_v40 = vpack.c.bf16 %v447_v35, %v446_v34 }
  0xb3   : > { %v416_v41 = vpack.c.bf16 %v399_v37, %v398_v36  ;;  %v5059_v51 = vld [vmem:[%s6092_s4] ss:$0 sm:$0xff] }
  0xb4   : > { %4286 = vmatpush3.bf16.msra.mxu1 %v4493_v18  ;;  %v440_v18 = vld [vmem:[%s4978_s12 + $0xb0] sm:$0xff]  ;;  %v5065_v62 = vld [vmem:[%s6093_s5] ss:$0 sm:$0xff] }
  0xb5   : > { %4334 = vmatpush3.bf16.msra.mxu0 %v4494_v19  ;;  %4287 = vmatprep.subr.bf16.mxu1 %v4495_v20  ;;  %v441_v19 = vld [vmem:[%s4978_s12 + $0xb8] sm:$0xff] }
  0xb6   : > { %4335 = vmatprep.subr.bf16.mxu0 %v4496_v21  ;;  %v461_v26 = vpack.c.bf16 %v441_v19, %v440_v18 }
  0xb8   : > { %4288 = vmatpush3.bf16.msra.mxu1 %v4495_v20  ;;  %v392_v20 = vld [vmem:[%s4971_s21 + $0xb0] sm:$0xff] }
  0xb9   : > { %4336 = vmatpush3.bf16.msra.mxu0 %v4496_v21  ;;  %v393_v21 = vld [vmem:[%s4971_s21 + $0xb8] sm:$0xff] }
  0xba   : > { %v413_v27 = vpack.c.bf16 %v393_v21, %v392_v20 }
  0xbb   : > { %4290 = vmatmul.mubr.bf16.vlgmr.msra.gmra.mrb[0].mxu1 %v451_v30  ;;  %v444_v30 = vld [vmem:[%s4978_s12 + $0xd0] sm:$0xff] }
  0xbc   : > { %4338 = vmatmul.mubr.bf16.vlgmr.msra.gmra.mrb[0].mxu0 %v403_v31  ;;  %4293 = vmatprep.mubr.bf16.mxu1 %v452_v32  ;;  %v445_v31 = vld [vmem:[%s4978_s12 + $0xd8] sm:$0xff]  ;;  %v396_v32 = vld [vmem:[%s4971_s21 + $0xd0] sm:$0xff] }
  0xbd   : > { %4341 = vmatprep.mubr.bf16.mxu0 %v404_v33  ;;  %v397_v33 = vld [vmem:[%s4971_s21 + $0xd8] sm:$0xff]  ;;  %v463_v38 = vpack.c.bf16 %v445_v31, %v444_v30 }
  0xbe   : > { %v415_v39 = vpack.c.bf16 %v397_v33, %v396_v32 }
  0xc3   : > { %4294 = vmatmul.mubr.bf16.gmra.mrb[4].mxu1 %v453_v42  ;;  %v448_v42 = vld [vmem:[%s4978_s12 + $0xf0] sm:$0xff] }
  0xc4   : > { %4342 = vmatmul.mubr.bf16.gmra.mrb[4].mxu0 %v405_v43  ;;  %4297 = vmatprep.mubr.bf16.mxu1 %v454_v44  ;;  %v449_v43 = vld [vmem:[%s4978_s12 + $0xf8] sm:$0xff]  ;;  %v400_v44 = vld [vmem:[%s4971_s21 + $0xf0] sm:$0xff] }
  0xc5   : > { %4345 = vmatprep.mubr.bf16.mxu0 %v406_v45  ;;  %v401_v45 = vld [vmem:[%s4971_s21 + $0xf8] sm:$0xff]  ;;  %v465_v46 = vpack.c.bf16 %v449_v43, %v448_v42  ;;  %s4703_s21 = smov [#allocation11]  }
  0xc6   : > { %v417_v47 = vpack.c.bf16 %v401_v45, %v400_v44  ;;  %s4617_s2 = sshll.u32 %s4703_s21, 4  ;;  %s4618_s2 = int_to_ptr.vmem [resolvable:$false] %s4617_s2 }
  0xc7   : > { %s4619_s10 = scalar_lea.vmem %s4618_s2, 64  ;;  %p4620_p4 = scmp.lt.s32.totalorder %s6046_s18, %s4618_s2 }
  0xc8   : > { %p4621_p5 = scmp.lt.s32.totalorder %s4619_s10, %s4613_s15 }
  0xca   : > { %p4622_p3 = por %p4621_p5, %p4620_p4 }
  0xcb   : > { %4298 = vmatmul.mubr.bf16.gmra.mrb[8].mxu1 %v455_v54 }
  0xcc   : > { %4346 = vmatmul.mubr.bf16.gmra.mrb[8].mxu0 %v407_v55  ;;  %4301 = vmatprep.mubr.bf16.mxu1 %v456_v56  ;;  %p4623_p7 = pnand %p4622_p3, %p4616_p10 }
  0xcd   : > { %4349 = vmatprep.mubr.bf16.mxu0 %v408_v57 }
  0xd3   : > { %4302 = vmatmul.mubr.bf16.gmra.mrb[12].mxu1 %v457_v2 }
  0xd4   : > { %4350 = vmatmul.mubr.bf16.gmra.mrb[12].mxu0 %v409_v3  ;;  %4305 = vmatprep.mubr.bf16.mxu1 %v458_v4 }
  0xd5   : > { %4353 = vmatprep.mubr.bf16.mxu0 %v410_v5 }
  0xdb   : > { %4306 = vmatmul.mubr.bf16.gmra.mrb[16].mxu1 %v459_v14 }
  0xdc   : > { %4354 = vmatmul.mubr.bf16.gmra.mrb[16].mxu0 %v411_v15  ;;  %4309 = vmatprep.mubr.bf16.mxu1 %v460_v16 }
  0xdd   : > { %4357 = vmatprep.mubr.bf16.mxu0 %v412_v17 }
  0xe3   : > { %4310 = vmatmul.mubr.bf16.gmra.mrb[20].mxu1 %v461_v26 }
  0xe4   : > { %4358 = vmatmul.mubr.bf16.gmra.mrb[20].mxu0 %v413_v27  ;;  %4313 = vmatprep.mubr.bf16.mxu1 %v462_v28 }
  0xe5   : > { %4361 = vmatprep.mubr.bf16.mxu0 %v414_v29 }
  0xeb   : > { %4314 = vmatmul.mubr.bf16.gmra.mrb[24].mxu1 %v463_v38 }
  0xec   : > { %4362 = vmatmul.mubr.bf16.gmra.mrb[24].mxu0 %v415_v39  ;;  %4317 = vmatprep.mubr.bf16.mxu1 %v464_v40 }
  0xed   : > { %4365 = vmatprep.mubr.bf16.mxu0 %v416_v41 }
  0xf3   : > { %4318 = vmatmul.mubr.bf16.gmra.mrb[28].mxu1 %v465_v46 }
  0xf4   : > { %4366 = vmatmul.mubr.bf16.gmra.mrb[28].mxu0 %v417_v47 }
 0x18e   : > { %v4291_v48 = vpop.f32.mrb[0].mxu1 }
 0x18f   : > { %v4339_v49 = vpop.f32.mrb[0].mxu0  ;;  %v580_v50 = vpop.f32.mrb[1].mxu1 }
 0x190   : > { %v798_v52 = vadd.f32 %v4339_v49, %v4291_v48  ;;  %v789_v53 = vpop.f32.mrb[1].mxu0  ;;  %v4292_v54 = vpop.f32.mrb[2].mxu1 }
 0x191   : > { %v790_v55 = vadd.f32 %v789_v53, %v580_v50  ;;  %v4340_v56 = vpop.f32.mrb[2].mxu0  ;;  %v583_v57 = vpop.f32.mrb[3].mxu1 }
 0x192   : > { %v801_v58 = vadd.f32 %v4340_v56, %v4292_v54  ;;  %v792_v59 = vpop.f32.mrb[3].mxu0  ;;  %v925_v60 = vadd.f32 %v5059_v51, %v798_v52 }
 0x193   : > { %v793_v61 = vadd.f32 %v792_v59, %v583_v57  ;;  %v923_v63 = vadd.f32 %v5059_v51, %v790_v55 }
 0x194   : > { %v926_v0 = vadd.f32 %v5059_v51, %v801_v58  ;;  %v957_v1 = vmax.f32 %v925_v60, 0.0 }
 0x195   : > { %v924_v2 = vadd.f32 %v5059_v51, %v793_v61  ;;  %v955_v3 = vmax.f32 %v923_v63, 0.0 }
 0x196   : > { %v958_v4 = vmax.f32 %v926_v0, 0.0  ;;  %v4295_v5 = vpop.f32.mrb[4].mxu1  ;;  %v996_v6 = vmul.f32 %v5065_v62, %v957_v1 }
 0x197   : > { %v956_v7 = vmax.f32 %v924_v2, 0.0  ;;  %v4343_v8 = vpop.f32.mrb[4].mxu0  ;;  %v596_v9 = vpop.f32.mrb[5].mxu1  ;;  %v994_v10 = vmul.f32 %v5065_v62, %v955_v3 }
 0x198   : > { %v814_v11 = vadd.f32 %v4343_v8, %v4295_v5  ;;  %1030 = vadd.xlane.f32.xlu1 %v996_v6  ;;  %v805_v12 = vpop.f32.mrb[5].mxu0  ;;  %v4296_v13 = vpop.f32.mrb[6].mxu1  ;;  %v997_v20 = vmul.f32 %v5065_v62, %v958_v4 }
 0x199   : > { %v806_v14 = vadd.f32 %v805_v12, %v596_v9  ;;  %v4344_v15 = vpop.f32.mrb[6].mxu0  ;;  %1026 = vadd.xlane.f32.xlu0 %v994_v10  ;;  %v599_v16 = vpop.f32.mrb[7].mxu1  ;;  %v995_v23 = vmul.f32 %v5065_v62, %v956_v7 }
 0x19a   : > { %v929_v17 = vadd.f32 %v5059_v51, %v814_v11  ;;  %v817_v18 = vadd.f32 %v4344_v15, %v4296_v13  ;;  %v808_v19 = vpop.f32.mrb[7].mxu0 }
 0x19b   : > { %v927_v21 = vadd.f32 %v5059_v51, %v806_v14  ;;  %v809_v22 = vadd.f32 %v808_v19, %v599_v16 }
 0x19c   : > { %v961_v24 = vmax.f32 %v929_v17, 0.0  ;;  %v930_v25 = vadd.f32 %v5059_v51, %v817_v18  ;;  %1032 = vadd.xlane.f32.xlu1 %v997_v20 }
 0x19d   : > { %v928_v26 = vadd.f32 %v5059_v51, %v809_v22  ;;  %1028 = vadd.xlane.f32.xlu0 %v995_v23  ;;  %v959_v30 = vmax.f32 %v927_v21, 0.0 }
 0x19e   : > { %v962_v27 = vmax.f32 %v930_v25, 0.0  ;;  %v4299_v28 = vpop.f32.mrb[8].mxu1  ;;  %v1000_v29 = vmul.f32 %v5065_v62, %v961_v24 }
 0x19f   : > { %v4347_v31 = vpop.f32.mrb[8].mxu0  ;;  %v612_v32 = vpop.f32.mrb[9].mxu1  ;;  %v960_v33 = vmax.f32 %v928_v26, 0.0  ;;  %v998_v46 = vmul.f32 %v5065_v62, %v959_v30 }
 0x1a0   : > { %v830_v34 = vadd.f32 %v4347_v31, %v4299_v28  ;;  %v821_v35 = vpop.f32.mrb[9].mxu0  ;;  %v4300_v36 = vpop.f32.mrb[10].mxu1  ;;  %v1001_v37 = vmul.f32 %v5065_v62, %v962_v27 }
 0x1a1   : > { %v822_v38 = vadd.f32 %v821_v35, %v612_v32  ;;  %v4348_v39 = vpop.f32.mrb[10].mxu0  ;;  %1038 = vadd.xlane.f32.xlu0 %v1000_v29  ;;  %v615_v40 = vpop.f32.mrb[11].mxu1  ;;  %v999_v49 = vmul.f32 %v5065_v62, %v960_v33  ;;  %v4701_v33 = vmov 0  }
 0x1a2   : > { %v933_v41 = vadd.f32 %v5059_v51, %v830_v34  ;;  %v833_v42 = vadd.f32 %v4348_v39, %v4300_v36  ;;  %1040 = vadd.xlane.f32.xlu1 %v1001_v37  ;;  %v824_v43 = vpop.f32.mrb[11].mxu0  ;;  %4480 = vset.pattern.permute.xlu0 %v4701_v33 }
 0x1a3   : > { %v931_v44 = vadd.f32 %v5059_v51, %v822_v38  ;;  %v825_v45 = vadd.f32 %v824_v43, %v615_v40  ;;  %4479 = vset.pattern.permute.xlu1 %v4701_v33 }
 0x1a4   : > { %v965_v47 = vmax.f32 %v933_v41, 0.0  ;;  %v934_v48 = vadd.f32 %v5059_v51, %v833_v42 }
 0x1a5   : > { %v932_v50 = vadd.f32 %v5059_v51, %v825_v45  ;;  %1034 = vadd.xlane.f32.xlu0 %v998_v46  ;;  %v963_v55 = vmax.f32 %v931_v44, 0.0 }
 0x1a6   : > { %v966_v52 = vmax.f32 %v934_v48, 0.0  ;;  %1036 = vadd.xlane.f32.xlu1 %v999_v49  ;;  %v4303_v53 = vpop.f32.mrb[12].mxu1  ;;  %v1004_v54 = vmul.f32 %v5065_v62, %v965_v47 }
 0x1a7   : > { %v4351_v56 = vpop.f32.mrb[12].mxu0  ;;  %v628_v57 = vpop.f32.mrb[13].mxu1  ;;  %v964_v58 = vmax.f32 %v932_v50, 0.0  ;;  %v1002_v8 = vmul.f32 %v5065_v62, %v963_v55 }
 0x1a8   : > { %v846_v59 = vadd.f32 %v4351_v56, %v4303_v53  ;;  %v837_v60 = vpop.f32.mrb[13].mxu0  ;;  %v4304_v61 = vpop.f32.mrb[14].mxu1  ;;  %v1005_v63 = vmul.f32 %v5065_v62, %v966_v52 }
 0x1a9   : > { %v838_v0 = vadd.f32 %v837_v60, %v628_v57  ;;  %v4352_v1 = vpop.f32.mrb[14].mxu0  ;;  %1046 = vadd.xlane.f32.xlu0 %v1004_v54  ;;  %v631_v2 = vpop.f32.mrb[15].mxu1  ;;  %v1003_v11 = vmul.f32 %v5065_v62, %v964_v58 }
 0x1aa   : > { %v937_v3 = vadd.f32 %v5059_v51, %v846_v59  ;;  %v849_v4 = vadd.f32 %v4352_v1, %v4304_v61  ;;  %v840_v5 = vpop.f32.mrb[15].mxu0  ;;  %1048 = vadd.xlane.f32.xlu1 %v1005_v63 }
 0x1ab   : > { %v935_v6 = vadd.f32 %v5059_v51, %v838_v0  ;;  %v841_v7 = vadd.f32 %v840_v5, %v631_v2 }
 0x1ac   : > { %v969_v9 = vmax.f32 %v937_v3, 0.0  ;;  %v938_v10 = vadd.f32 %v5059_v51, %v849_v4 }
 0x1ad   : > { %v936_v12 = vadd.f32 %v5059_v51, %v841_v7  ;;  %1042 = vadd.xlane.f32.xlu0 %v1002_v8  ;;  %v967_v16 = vmax.f32 %v935_v6, 0.0 }
 0x1ae   : > { %v970_v13 = vmax.f32 %v938_v10, 0.0  ;;  %1044 = vadd.xlane.f32.xlu1 %v1003_v11  ;;  %v4307_v14 = vpop.f32.mrb[16].mxu1  ;;  %v1008_v15 = vmul.f32 %v5065_v62, %v969_v9 }
 0x1af   : > { %v4355_v17 = vpop.f32.mrb[16].mxu0  ;;  %v644_v18 = vpop.f32.mrb[17].mxu1  ;;  %v968_v19 = vmax.f32 %v936_v12, 0.0  ;;  %v1006_v32 = vmul.f32 %v5065_v62, %v967_v16 }
 0x1b0   : > { %v862_v20 = vadd.f32 %v4355_v17, %v4307_v14  ;;  %v853_v21 = vpop.f32.mrb[17].mxu0  ;;  %v4308_v22 = vpop.f32.mrb[18].mxu1  ;;  %v1009_v23 = vmul.f32 %v5065_v62, %v970_v13 }
 0x1b1   : > { %v854_v24 = vadd.f32 %v853_v21, %v644_v18  ;;  %v4356_v25 = vpop.f32.mrb[18].mxu0  ;;  %1054 = vadd.xlane.f32.xlu0 %v1008_v15  ;;  %v647_v26 = vpop.f32.mrb[19].mxu1  ;;  %v1007_v36 = vmul.f32 %v5065_v62, %v968_v19 }
 0x1b2   : > { %v941_v27 = vadd.f32 %v5059_v51, %v862_v20  ;;  %v865_v28 = vadd.f32 %v4356_v25, %v4308_v22  ;;  %v856_v29 = vpop.f32.mrb[19].mxu0  ;;  %1056 = vadd.xlane.f32.xlu1 %v1009_v23 }
 0x1b3   : > { %v939_v30 = vadd.f32 %v5059_v51, %v854_v24  ;;  %v857_v31 = vadd.f32 %v856_v29, %v647_v26 }
 0x1b4   : > { %v973_v34 = vmax.f32 %v941_v27, 0.0  ;;  %v942_v35 = vadd.f32 %v5059_v51, %v865_v28 }
 0x1b5   : > { %v940_v37 = vadd.f32 %v5059_v51, %v857_v31  ;;  %1050 = vadd.xlane.f32.xlu0 %v1006_v32  ;;  %v971_v41 = vmax.f32 %v939_v30, 0.0 }
 0x1b6   : > { %v974_v38 = vmax.f32 %v942_v35, 0.0  ;;  %1052 = vadd.xlane.f32.xlu1 %v1007_v36  ;;  %v4311_v39 = vpop.f32.mrb[20].mxu1  ;;  %v1012_v40 = vmul.f32 %v5065_v62, %v973_v34 }
 0x1b7   : > { %v4359_v42 = vpop.f32.mrb[20].mxu0  ;;  %v660_v43 = vpop.f32.mrb[21].mxu1  ;;  %v972_v44 = vmax.f32 %v940_v37, 0.0  ;;  %v1010_v58 = vmul.f32 %v5065_v62, %v971_v41 }
 0x1b8   : > { %v878_v45 = vadd.f32 %v4359_v42, %v4311_v39  ;;  %v869_v46 = vpop.f32.mrb[21].mxu0  ;;  %v4312_v47 = vpop.f32.mrb[22].mxu1  ;;  %v1013_v48 = vmul.f32 %v5065_v62, %v974_v38 }
 0x1b9   : > { %v870_v49 = vadd.f32 %v869_v46, %v660_v43  ;;  %v4360_v50 = vpop.f32.mrb[22].mxu0  ;;  %1062 = vadd.xlane.f32.xlu0 %v1012_v40  ;;  %v663_v52 = vpop.f32.mrb[23].mxu1  ;;  %v1011_v61 = vmul.f32 %v5065_v62, %v972_v44 }
 0x1ba   : > { %v945_v53 = vadd.f32 %v5059_v51, %v878_v45  ;;  %v881_v54 = vadd.f32 %v4360_v50, %v4312_v47  ;;  %v872_v55 = vpop.f32.mrb[23].mxu0  ;;  %1064 = vadd.xlane.f32.xlu1 %v1013_v48 }
 0x1bb   : > { %v943_v56 = vadd.f32 %v5059_v51, %v870_v49  ;;  %v873_v57 = vadd.f32 %v872_v55, %v663_v52 }
 0x1bc   : > { %v977_v59 = vmax.f32 %v945_v53, 0.0  ;;  %v946_v60 = vadd.f32 %v5059_v51, %v881_v54 }
 0x1bd   : > { %v944_v63 = vadd.f32 %v5059_v51, %v873_v57  ;;  %1058 = vadd.xlane.f32.xlu0 %v1010_v58  ;;  %v975_v3 = vmax.f32 %v943_v56, 0.0  ;;  %v1156_v56 = vlaneseq }
 0x1be   : > { %v978_v0 = vmax.f32 %v946_v60, 0.0  ;;  %1060 = vadd.xlane.f32.xlu1 %v1011_v61  ;;  %v4315_v1 = vpop.f32.mrb[24].mxu1  ;;  %v1016_v2 = vmul.f32 %v5065_v62, %v977_v59  ;;  %v5133_v59 = vstv %s1090_s25 }
 0x1bf   : > { %v4363_v4 = vpop.f32.mrb[24].mxu0  ;;  %v676_v5 = vpop.f32.mrb[25].mxu1  ;;  %v976_v6 = vmax.f32 %v944_v63, 0.0  ;;  %v1014_v19 = vmul.f32 %v5065_v62, %v975_v3  ;;  %v5131_v58 = vshrl.u32 %v1156_v56, 7  ;;  %vm4052_vm15 = vcmp.lt.s32.totalorder %v1156_v56, 256 }
 0x1c0   : > { %v894_v7 = vadd.f32 %v4363_v4, %v4315_v1  ;;  %v885_v8 = vpop.f32.mrb[25].mxu0  ;;  %v4316_v9 = vpop.f32.mrb[26].mxu1  ;;  %v1017_v10 = vmul.f32 %v5065_v62, %v978_v0 }
 0x1c1   : > { %v886_v11 = vadd.f32 %v885_v8, %v676_v5  ;;  %v4364_v12 = vpop.f32.mrb[26].mxu0  ;;  %1070 = vadd.xlane.f32.xlu0 %v1016_v2  ;;  %v679_v13 = vpop.f32.mrb[27].mxu1  ;;  %v1015_v22 = vmul.f32 %v5065_v62, %v976_v6  ;;  %v5136_v61 = vsub.s32 0, %v5131_v58  ;;  %v5139_v63 = vsub.s32 1, %v5131_v58 }
 0x1c2   : > { %v949_v14 = vadd.f32 %v5059_v51, %v894_v7  ;;  %v897_v15 = vadd.f32 %v4364_v12, %v4316_v9  ;;  %v888_v16 = vpop.f32.mrb[27].mxu0  ;;  %1072 = vadd.xlane.f32.xlu1 %v1017_v10  ;;  %v5145_v0 = vsub.s32 3, %v5131_v58  ;;  %v5148_v2 = vsub.s32 4, %v5131_v58 }
 0x1c3   : > { %v947_v17 = vadd.f32 %v5059_v51, %v886_v11  ;;  %v889_v18 = vadd.f32 %v888_v16, %v679_v13  ;;  %v5151_v3 = vsub.s32 5, %v5131_v58  ;;  %v5154_v4 = vsub.s32 6, %v5131_v58 }
 0x1c4   : > { %v981_v20 = vmax.f32 %v949_v14, 0.0  ;;  %v950_v21 = vadd.f32 %v5059_v51, %v897_v15  ;;  %v5157_v5 = vsub.s32 7, %v5131_v58 }
 0x1c5   : > { %v948_v23 = vadd.f32 %v5059_v51, %v889_v18  ;;  %1066 = vadd.xlane.f32.xlu0 %v1014_v19  ;;  %v979_v27 = vmax.f32 %v947_v17, 0.0 }
 0x1c6   : > { %v982_v24 = vmax.f32 %v950_v21, 0.0  ;;  %1068 = vadd.xlane.f32.xlu1 %v1015_v22  ;;  %v4319_v25 = vpop.f32.mrb[28].mxu1  ;;  %v1020_v26 = vmul.f32 %v5065_v62, %v981_v20 }
 0x1c7   : > { %v4367_v28 = vpop.f32.mrb[28].mxu0  ;;  %v692_v29 = vpop.f32.mrb[29].mxu1  ;;  %v980_v30 = vmax.f32 %v948_v23, 0.0  ;;  %v1018_v43 = vmul.f32 %v5065_v62, %v979_v27 }
 0x1c8   : > { %v910_v31 = vadd.f32 %v4367_v28, %v4319_v25  ;;  %v901_v32 = vpop.f32.mrb[29].mxu0  ;;  %v4320_v33 = vpop.f32.mrb[30].mxu1  ;;  %v1021_v34 = vmul.f32 %v5065_v62, %v982_v24 }
 0x1c9   : > { %v902_v35 = vadd.f32 %v901_v32, %v692_v29  ;;  %v4368_v36 = vpop.f32.mrb[30].mxu0  ;;  %1078 = vadd.xlane.f32.xlu0 %v1020_v26  ;;  %v695_v37 = vpop.f32.mrb[31].mxu1  ;;  %v1019_v45 = vmul.f32 %v5065_v62, %v980_v30 }
 0x1ca   : > { %v913_v38 = vadd.f32 %v4368_v36, %v4320_v33  ;;  %v904_v39 = vpop.f32.mrb[31].mxu0  ;;  %1080 = vadd.xlane.f32.xlu1 %v1021_v34  ;;  %v953_v40 = vadd.f32 %v5059_v51, %v910_v31 }
 0x1cb   : > { %v951_v41 = vadd.f32 %v5059_v51, %v902_v35  ;;  %v905_v42 = vadd.f32 %v904_v39, %v695_v37 }
 0x1cc   : > { %v954_v44 = vadd.f32 %v5059_v51, %v913_v38  ;;  %v985_v49 = vmax.f32 %v953_v40, 0.0 }
 0x1cd   : > { %v983_v46 = vmax.f32 %v951_v41, 0.0  ;;  %v952_v47 = vadd.f32 %v5059_v51, %v905_v42  ;;  %1074 = vadd.xlane.f32.xlu0 %v1018_v43  ;;  %v4702_v51 = vmov 1966171168  }
 0x1ce   : > { %v986_v48 = vmax.f32 %v954_v44, 0.0  ;;  %1076 = vadd.xlane.f32.xlu1 %v1019_v45  ;;  %v1024_v54 = vmul.f32 %v5065_v62, %v985_v49  ;;  %v2185_v57 = vunpack.c.l.s4 %v4702_v51 }
 0x1cf   : > { %v1022_v50 = vmul.f32 %v5065_v62, %v983_v46  ;;  %v984_v52 = vmax.f32 %v952_v47, 0.0 }
 0x1d0   : > { %v1025_v53 = vmul.f32 %v5065_v62, %v986_v48  ;;  %v2186_v60 = vunpack.c.0.s8 %v2185_v57 }
 0x1d1   : > { %1082 = vadd.xlane.f32.xlu0 %v1022_v50  ;;  %v1023_v55 = vmul.f32 %v5065_v62, %v984_v52  ;;  %v5142_v62 = vsub.s32 2, %v5131_v58 }
 0x1d2   : > { %1088 = vadd.xlane.f32.xlu1 %v1025_v53  ;;  %v5162_v9 = vsub.s32 %v2186_v60, %v5131_v58 }
 0x1d5   : > { %1086 = vadd.xlane.f32.xlu0 %v1024_v54 }
 0x1d6   : > { %1084 = vadd.xlane.f32.xlu1 %v1023_v55 }
 0x225   : > { %v1031_v1 = vpop.xlane.xlu1 %1030 }
 0x226   : > { %v1094_v6 = vadd.f32 %v5133_v59, %v1031_v1  ;;  %v1027_v7 = vpop.xlane.xlu0 %1026 }
 0x227   : > { %v1092_v8 = vadd.f32 %v5133_v59, %v1027_v7 }
 0x228   : > { %v1223_v10 = vrot.slane %v1094_v6, %v5136_v61  ;;  %v1227_v11 = vrot.slane %v1094_v6, %v5139_v63  ;;  %v1231_v12 = vrot.slane %v1094_v6, %v5142_v62  ;;  %v1235_v13 = vrot.slane %v1094_v6, %v5145_v0 }
 0x229   : > { %v1033_v14 = vpop.xlane.xlu1 %1032  ;;  %v1239_v15 = vrot.slane %v1094_v6, %v5148_v2  ;;  %v1243_v16 = vrot.slane %v1094_v6, %v5151_v3  ;;  %v1247_v17 = vrot.slane %v1094_v6, %v5154_v4  ;;  %v1251_v18 = vrot.slane %v1094_v6, %v5157_v5 }
 0x22a   : > { %v1095_v19 = vadd.f32 %v5133_v59, %v1033_v14  ;;  %v1029_v20 = vpop.xlane.xlu0 %1028  ;;  %v2278_v21 = vcombine.low %v1223_v10, %v1227_v11  ;;  %v2279_v22 = vcombine.low %v1231_v12, %v1235_v13  ;;  %v1159_v23 = vrot.slane %v1092_v8, %v5136_v61 }
 0x22b   : > { %v5175_v24 = vadd.f32 %v5133_v59, %v1029_v20  ;;  %v2280_v25 = vcombine.low %v1239_v15, %v1243_v16  ;;  %v2281_v26 = vcombine.low %v1247_v17, %v1251_v18  ;;  %v1163_v27 = vrot.slane %v1092_v8, %v5139_v63 }
 0x22c   : > { %v2288_v28 = vrot.slane %v2278_v21, %v5162_v9  ;;  %v2295_v29 = vrot.slane %v2279_v22, %v5162_v9  ;;  %v1167_v30 = vrot.slane %v1092_v8, %v5142_v62  ;;  %v1171_v31 = vrot.slane %v1092_v8, %v5145_v0 }
 0x22d   : > { %v2302_v32 = vrot.slane %v2280_v25, %v5162_v9  ;;  %v2309_v33 = vrot.slane %v2281_v26, %v5162_v9  ;;  %v1175_v34 = vrot.slane %v1092_v8, %v5148_v2  ;;  %v1179_v35 = vrot.slane %v1092_v8, %v5151_v3 }
 0x22e   : > { %v1039_v36 = vpop.xlane.xlu0 %1038  ;;  %v2310_v37 = vcombine.low %v2288_v28, %v2295_v29  ;;  %v1183_v38 = vrot.slane %v1092_v8, %v5154_v4  ;;  %v1187_v39 = vrot.slane %v1092_v8, %v5157_v5  ;;  %v2180_v40 = vcombine.low %v1159_v23, %v1163_v27 }
 0x22f   : > { %v5189_v41 = vadd.f32 %v5133_v59, %v1039_v36  ;;  %v1041_v42 = vpop.xlane.xlu1 %1040  ;;  %v2311_v43 = vcombine.low %v2302_v32, %v2309_v33  ;;  %v2181_v44 = vcombine.low %v1167_v30, %v1171_v31  ;;  %v2182_v45 = vcombine.low %v1175_v34, %v1179_v35 }
 0x230   : > { %v5192_v46 = vadd.f32 %v5133_v59, %v1041_v42  ;;  %v2318_v47 = vrot.slane %v2310_v37, %v5162_v9  ;;  %v2183_v48 = vcombine.low %v1183_v38, %v1187_v39  ;;  %v2190_v49 = vrot.slane %v2180_v40, %v5162_v9 }
 0x231   : > { %v2325_v50 = vrot.slane %v2311_v43, %v5162_v9  ;;  %v2197_v52 = vrot.slane %v2181_v44, %v5162_v9  ;;  %v2204_v53 = vrot.slane %v2182_v45, %v5162_v9  ;;  %v1255_v54 = vrot.slane %v1095_v19, %v5136_v61 }
 0x232   : > { %v1035_v55 = vpop.xlane.xlu0 %1034  ;;  %v2211_v51 = vrot.slane %v2183_v48, %v5162_v9  ;;  %v1259_v57 = vrot.slane %v1095_v19, %v5139_v63  ;;  %v1263_v60 = vrot.slane %v1095_v19, %v5142_v62  ;;  %v1267_v1 = vrot.slane %v1095_v19, %v5145_v0 }
 0x233   : > { %v5205_v6 = vadd.f32 %v5133_v59, %v1035_v55  ;;  %v1037_v7 = vpop.xlane.xlu1 %1036  ;;  %v2326_v8 = vcombine.low %v2318_v47, %v2325_v50  ;;  %v2212_v10 = vcombine.low %v2190_v49, %v2197_v52  ;;  %v1271_v11 = vrot.slane %v1095_v19, %v5148_v2 }
 0x234   : > { %v5209_v12 = vadd.f32 %v5133_v59, %v1037_v7  ;;  %v2213_v13 = vcombine.low %v2204_v53, %v2211_v51  ;;  %v1275_v14 = vrot.slane %v1095_v19, %v5151_v3  ;;  %v1279_v15 = vrot.slane %v1095_v19, %v5154_v4 }
 0x235   : > { %3755 = vperm.xlu1 %4479, %v2326_v8   ;;  %v2220_v16 = vrot.slane %v2212_v10, %v5162_v9  ;;  %v1283_v17 = vrot.slane %v1095_v19, %v5157_v5  ;;  %v2327_v18 = vcombine.low %v1255_v54, %v1259_v57  ;;  %v2328_v20 = vcombine.low %v1263_v60, %v1267_v1 }
 0x236   : > { %v2227_v21 = vrot.slane %v2213_v13, %v5162_v9  ;;  %v1047_v22 = vpop.xlane.xlu0 %1046  ;;  %v2329_v23 = vcombine.low %v1271_v11, %v1275_v14  ;;  %v1191_v25 = vrot.slane %v5175_v24, %v5136_v61  ;;  %v1195_v26 = vrot.slane %v5175_v24, %v5139_v63 }
 0x237   : > { %v5221_v27 = vadd.f32 %v5133_v59, %v1047_v22  ;;  %v1049_v28 = vpop.xlane.xlu1 %1048  ;;  %v2330_v29 = vcombine.low %v1279_v15, %v1283_v17  ;;  %v2337_v30 = vrot.slane %v2327_v18, %v5162_v9  ;;  %v2344_v19 = vrot.slane %v2328_v20, %v5162_v9 }
 0x238   : > { %v2228_v31 = vcombine.low %v2220_v16, %v2227_v21  ;;  %v5226_v32 = vadd.f32 %v5133_v59, %v1049_v28  ;;  %v2351_v33 = vrot.slane %v2329_v23, %v5162_v9  ;;  %v1199_v34 = vrot.slane %v5175_v24, %v5142_v62 }
 0x239   : > { %v2358_v35 = vrot.slane %v2330_v29, %v5162_v9  ;;  %v2359_v36 = vcombine.low %v2337_v30, %v2344_v19  ;;  %v1203_v37 = vrot.slane %v5175_v24, %v5145_v0  ;;  %v1207_v38 = vrot.slane %v5175_v24, %v5148_v2 }
 0x23a   : > { %3749 = vperm.xlu0 %4480, %v2228_v31   ;;  %v1043_v39 = vpop.xlane.xlu0 %1042  ;;  %v1211_v40 = vrot.slane %v5175_v24, %v5151_v3  ;;  %v1215_v42 = vrot.slane %v5175_v24, %v5154_v4  ;;  %v1219_v43 = vrot.slane %v5175_v24, %v5157_v5  ;;  %v2229_v44 = vcombine.low %v1191_v25, %v1195_v26 }
 0x23b   : > { %v2360_v45 = vcombine.low %v2351_v33, %v2358_v35  ;;  %v2367_v47 = vrot.slane %v2359_v36, %v5162_v9  ;;  %v5244_v48 = vadd.f32 %v5133_v59, %v1043_v39  ;;  %v1045_v49 = vpop.xlane.xlu1 %1044  ;;  %v2230_v50 = vcombine.low %v1199_v34, %v1203_v37 }
 0x23c   : > { %v5247_v52 = vadd.f32 %v5133_v59, %v1045_v49  ;;  %v2231_v53 = vcombine.low %v1207_v38, %v1211_v40  ;;  %v2232_v54 = vcombine.low %v1215_v42, %v1219_v43  ;;  %v2239_v55 = vrot.slane %v2229_v44, %v5162_v9 }
 0x23d   : > { %v2374_v51 = vrot.slane %v2360_v45, %v5162_v9  ;;  %v2246_v24 = vrot.slane %v2230_v50, %v5162_v9  ;;  %v1351_v57 = vrot.slane %v5189_v41, %v5136_v61  ;;  %v1355_v60 = vrot.slane %v5189_v41, %v5139_v63 }
 0x23e   : > { %v2253_v1 = vrot.slane %v2231_v53, %v5162_v9  ;;  %v2260_v7 = vrot.slane %v2232_v54, %v5162_v9  ;;  %v1055_v8 = vpop.xlane.xlu0 %1054  ;;  %v1359_v10 = vrot.slane %v5189_v41, %v5142_v62  ;;  %v1363_v11 = vrot.slane %v5189_v41, %v5145_v0 }
 0x23f   : > { %v2375_v13 = vcombine.low %v2367_v47, %v2374_v51  ;;  %v2261_v14 = vcombine.low %v2239_v55, %v2246_v24  ;;  %v5263_v15 = vadd.f32 %v5133_v59, %v1055_v8  ;;  %v1057_v16 = vpop.xlane.xlu1 %1056  ;;  %v1367_v17 = vrot.slane %v5189_v41, %v5148_v2 }
 0x240   : > { %v2262_v18 = vcombine.low %v2253_v1, %v2260_v7  ;;  %v5268_v20 = vadd.f32 %v5133_v59, %v1057_v16  ;;  %v1371_v21 = vrot.slane %v5189_v41, %v5151_v3  ;;  %v1375_v22 = vrot.slane %v5189_v41, %v5154_v4 }
 0x241   : > { %3758 = vperm.xlu1 %4479, %v2375_v13   ;;  %v2269_v23 = vrot.slane %v2261_v14, %v5162_v9  ;;  %v1379_v25 = vrot.slane %v5189_v41, %v5157_v5  ;;  %v2474_v26 = vcombine.low %v1351_v57, %v1355_v60  ;;  %v2475_v28 = vcombine.low %v1359_v10, %v1363_v11 }
 0x242   : > { %v2276_v29 = vrot.slane %v2262_v18, %v5162_v9  ;;  %v2476_v30 = vcombine.low %v1367_v17, %v1371_v21  ;;  %v1051_v19 = vpop.xlane.xlu0 %1050  ;;  %v1287_v31 = vrot.slane %v5205_v6, %v5136_v61  ;;  %v1291_v33 = vrot.slane %v5205_v6, %v5139_v63 }
 0x243   : > { %v2477_v34 = vcombine.low %v1375_v22, %v1379_v25  ;;  %v2484_v35 = vrot.slane %v2474_v26, %v5162_v9  ;;  %v2491_v36 = vrot.slane %v2475_v28, %v5162_v9  ;;  %v5285_v37 = vadd.f32 %v5133_v59, %v1051_v19  ;;  %v1053_v41 = vpop.xlane.xlu1 %1052 }
 0x244   : > { %v2277_v38 = vcombine.low %v2269_v23, %v2276_v29  ;;  %v2498_v39 = vrot.slane %v2476_v30, %v5162_v9  ;;  %v5289_v40 = vadd.f32 %v5133_v59, %v1053_v41  ;;  %v1295_v42 = vrot.slane %v5205_v6, %v5142_v62 }
 0x245   : > { %v2505_v43 = vrot.slane %v2477_v34, %v5162_v9  ;;  %v2506_v44 = vcombine.low %v2484_v35, %v2491_v36  ;;  %v1299_v45 = vrot.slane %v5205_v6, %v5145_v0  ;;  %v1303_v47 = vrot.slane %v5205_v6, %v5148_v2 }
 0x246   : > { %3752 = vperm.xlu1 %4479, %v2277_v38   ;;  %v1307_v49 = vrot.slane %v5205_v6, %v5151_v3  ;;  %v1311_v50 = vrot.slane %v5205_v6, %v5154_v4  ;;  %v1315_v53 = vrot.slane %v5205_v6, %v5157_v5  ;;  %v2376_v54 = vcombine.low %v1287_v31, %v1291_v33  ;;  %v1063_v55 = vpop.xlane.xlu0 %1062 }
 0x247   : > { %v2507_v51 = vcombine.low %v2498_v39, %v2505_v43  ;;  %v2514_v24 = vrot.slane %v2506_v44, %v5162_v9  ;;  %v2377_v57 = vcombine.low %v1295_v42, %v1299_v45  ;;  %v5306_v60 = vadd.f32 %v5133_v59, %v1063_v55  ;;  %v1065_v1 = vpop.xlane.xlu1 %1064 }
 0x248   : > { %v2378_v7 = vcombine.low %v1303_v47, %v1307_v49  ;;  %v2379_v8 = vcombine.low %v1311_v50, %v1315_v53  ;;  %v2386_v10 = vrot.slane %v2376_v54, %v5162_v9  ;;  %v5310_v11 = vadd.f32 %v5133_v59, %v1065_v1 }
 0x249   : > { %v2521_v13 = vrot.slane %v2507_v51, %v5162_v9  ;;  %v2393_v6 = vrot.slane %v2377_v57, %v5162_v9  ;;  %v1383_v14 = vrot.slane %v5192_v46, %v5136_v61  ;;  %v1387_v16 = vrot.slane %v5192_v46, %v5139_v63 }
 0x24a   : > { %v2400_v17 = vrot.slane %v2378_v7, %v5162_v9  ;;  %v2407_v18 = vrot.slane %v2379_v8, %v5162_v9  ;;  %v1391_v21 = vrot.slane %v5192_v46, %v5142_v62  ;;  %v1395_v22 = vrot.slane %v5192_v46, %v5145_v0  ;;  %v1059_v47 = vpop.xlane.xlu0 %1058 }
 0x24b   : > { %v2522_v23 = vcombine.low %v2514_v24, %v2521_v13  ;;  %v2408_v25 = vcombine.low %v2386_v10, %v2393_v6  ;;  %v1399_v26 = vrot.slane %v5192_v46, %v5148_v2  ;;  %v1403_v28 = vrot.slane %v5192_v46, %v5151_v3  ;;  %v1061_v49 = vpop.xlane.xlu1 %1060 }
 0x24c   : > { %v2409_v29 = vcombine.low %v2400_v17, %v2407_v18  ;;  %v1407_v30 = vrot.slane %v5192_v46, %v5154_v4  ;;  %v1411_v19 = vrot.slane %v5192_v46, %v5157_v5  ;;  %v2523_v31 = vcombine.low %v1383_v14, %v1387_v16 }
 0x24d   : > { %3767 = vperm.xlu1 %4479, %v2522_v23   ;;  %v2416_v33 = vrot.slane %v2408_v25, %v5162_v9  ;;  %v2524_v34 = vcombine.low %v1391_v21, %v1395_v22  ;;  %v2525_v35 = vcombine.low %v1399_v26, %v1403_v28  ;;  %v1447_v36 = vrot.slane %v5247_v52, %v5136_v61 }
 0x24e   : > { %v2423_v41 = vrot.slane %v2409_v29, %v5162_v9  ;;  %v2526_v38 = vcombine.low %v1407_v30, %v1411_v19  ;;  %v2533_v39 = vrot.slane %v2523_v31, %v5162_v9  ;;  %v1451_v42 = vrot.slane %v5247_v52, %v5139_v63  ;;  %v1071_v29 = vpop.xlane.xlu0 %1070 }
 0x24f   : > { %v2540_v43 = vrot.slane %v2524_v34, %v5162_v9  ;;  %v2547_v46 = vrot.slane %v2525_v35, %v5162_v9  ;;  %v1455_v44 = vrot.slane %v5247_v52, %v5142_v62  ;;  %v1459_v45 = vrot.slane %v5247_v52, %v5145_v0  ;;  %v1073_v30 = vpop.xlane.xlu1 %1072 }
 0x250   : > { %v2424_v50 = vcombine.low %v2416_v33, %v2423_v41  ;;  %v2554_v53 = vrot.slane %v2526_v38, %v5162_v9  ;;  %v1463_v54 = vrot.slane %v5247_v52, %v5148_v2  ;;  %v1467_v55 = vrot.slane %v5247_v52, %v5151_v3 }
 0x251   : > { %v2555_v51 = vcombine.low %v2533_v39, %v2540_v43  ;;  %v1471_v24 = vrot.slane %v5247_v52, %v5154_v4  ;;  %v1475_v57 = vrot.slane %v5247_v52, %v5157_v5  ;;  %v2621_v1 = vcombine.low %v1447_v36, %v1451_v42 }
 0x252   : > { %3761 = vperm.xlu1 %4479, %v2424_v50   ;;  %v2556_v7 = vcombine.low %v2547_v46, %v2554_v53  ;;  %v2622_v8 = vcombine.low %v1455_v44, %v1459_v45  ;;  %v2623_v10 = vcombine.low %v1463_v54, %v1467_v55  ;;  %v5355_v13 = vadd.f32 %v5133_v59, %v1059_v47 }
 0x253   : > { %v2563_v6 = vrot.slane %v2555_v51, %v5162_v9  ;;  %v2624_v14 = vcombine.low %v1471_v24, %v1475_v57  ;;  %v2631_v16 = vrot.slane %v2621_v1, %v5162_v9  ;;  %v5360_v17 = vadd.f32 %v5133_v59, %v1061_v49  ;;  %v1067_v1 = vpop.xlane.xlu0 %1066 }
 0x254   : > { %v2570_v18 = vrot.slane %v2556_v7, %v5162_v9  ;;  %v2638_v52 = vrot.slane %v2622_v8, %v5162_v9  ;;  %v2645_v21 = vrot.slane %v2623_v10, %v5162_v9  ;;  %v1319_v22 = vrot.slane %v5209_v12, %v5136_v61  ;;  %v1069_v7 = vpop.xlane.xlu1 %1068 }
 0x255   : > { %v2652_v23 = vrot.slane %v2624_v14, %v5162_v9  ;;  %v1323_v25 = vrot.slane %v5209_v12, %v5139_v63  ;;  %v1327_v26 = vrot.slane %v5209_v12, %v5142_v62  ;;  %v1331_v28 = vrot.slane %v5209_v12, %v5145_v0 }
 0x256   : > { %v2571_v19 = vcombine.low %v2563_v6, %v2570_v18  ;;  %v2653_v31 = vcombine.low %v2631_v16, %v2638_v52  ;;  %v1335_v33 = vrot.slane %v5209_v12, %v5148_v2  ;;  %v1339_v34 = vrot.slane %v5209_v12, %v5151_v3 }
 0x257   : > { %v2654_v35 = vcombine.low %v2645_v21, %v2652_v23  ;;  %v1343_v36 = vrot.slane %v5209_v12, %v5154_v4  ;;  %v1347_v41 = vrot.slane %v5209_v12, %v5157_v5  ;;  %v2425_v38 = vcombine.low %v1319_v22, %v1323_v25 }
 0x258   : > { %3770 = vperm.xlu1 %4479, %v2571_v19   ;;  %v2661_v39 = vrot.slane %v2653_v31, %v5162_v9  ;;  %v2426_v42 = vcombine.low %v1327_v26, %v1331_v28  ;;  %v2427_v43 = vcombine.low %v1335_v33, %v1339_v34  ;;  %v5384_v46 = vadd.f32 %v5133_v59, %v1071_v29 }
 0x259   : > { %v2668_v44 = vrot.slane %v2654_v35, %v5162_v9  ;;  %v2428_v45 = vcombine.low %v1343_v36, %v1347_v41  ;;  %v2435_v47 = vrot.slane %v2425_v38, %v5162_v9  ;;  %v5389_v49 = vadd.f32 %v5133_v59, %v1073_v30 }
 0x25a   : > { %v2442_v50 = vrot.slane %v2426_v42, %v5162_v9  ;;  %v2449_v12 = vrot.slane %v2427_v43, %v5162_v9  ;;  %v1479_v53 = vrot.slane %v5221_v27, %v5136_v61  ;;  %v1483_v54 = vrot.slane %v5221_v27, %v5139_v63 }
 0x25b   : > { %v2669_v55 = vcombine.low %v2661_v39, %v2668_v44  ;;  %v2456_v51 = vrot.slane %v2428_v45, %v5162_v9  ;;  %v1487_v24 = vrot.slane %v5221_v27, %v5142_v62  ;;  %v1491_v57 = vrot.slane %v5221_v27, %v5145_v0 }
 0x25c   : > { %v2457_v8 = vcombine.low %v2435_v47, %v2442_v50  ;;  %v1495_v10 = vrot.slane %v5221_v27, %v5148_v2  ;;  %v1499_v6 = vrot.slane %v5221_v27, %v5151_v3  ;;  %v1503_v14 = vrot.slane %v5221_v27, %v5154_v4 }
 0x25d   : > { %3776 = vperm.xlu0 %4480, %v2669_v55   ;;  %v2458_v16 = vcombine.low %v2449_v12, %v2456_v51  ;;  %v1507_v18 = vrot.slane %v5221_v27, %v5157_v5  ;;  %v2670_v52 = vcombine.low %v1479_v53, %v1483_v54  ;;  %v2671_v21 = vcombine.low %v1487_v24, %v1491_v57 }
 0x25e   : > { %v2465_v22 = vrot.slane %v2457_v8, %v5162_v9  ;;  %v2672_v23 = vcombine.low %v1495_v10, %v1499_v6  ;;  %v5412_v25 = vadd.f32 %v5133_v59, %v1067_v1  ;;  %v5415_v26 = vadd.f32 %v5133_v59, %v1069_v7 }
 0x25f   : > { %v2472_v28 = vrot.slane %v2458_v16, %v5162_v9  ;;  %v2673_v29 = vcombine.low %v1503_v14, %v1507_v18  ;;  %v2680_v30 = vrot.slane %v2670_v52, %v5162_v9  ;;  %v2687_v19 = vrot.slane %v2671_v21, %v5162_v9  ;;  %v1079_v14 = vpop.xlane.xlu0 %1078  ;;  %v1081_v16 = vpop.xlane.xlu1 %1080 }
 0x260   : > { %v2694_v27 = vrot.slane %v2672_v23, %v5162_v9  ;;  %v1415_v31 = vrot.slane %v5244_v48, %v5136_v61  ;;  %v1419_v33 = vrot.slane %v5244_v48, %v5139_v63  ;;  %v1423_v34 = vrot.slane %v5244_v48, %v5142_v62 }
 0x261   : > { %v2473_v35 = vcombine.low %v2465_v22, %v2472_v28  ;;  %v2701_v36 = vrot.slane %v2673_v29, %v5162_v9  ;;  %v2702_v41 = vcombine.low %v2680_v30, %v2687_v19  ;;  %v1427_v38 = vrot.slane %v5244_v48, %v5145_v0 }
 0x262   : > { %v1431_v39 = vrot.slane %v5244_v48, %v5148_v2  ;;  %v1435_v42 = vrot.slane %v5244_v48, %v5151_v3  ;;  %v1439_v43 = vrot.slane %v5244_v48, %v5154_v4  ;;  %v1443_v44 = vrot.slane %v5244_v48, %v5157_v5 }
 0x263   : > { %3764 = vperm.xlu1 %4479, %v2473_v35   ;;  %v2703_v45 = vcombine.low %v2694_v27, %v2701_v36  ;;  %v2710_v47 = vrot.slane %v2702_v41, %v5162_v9  ;;  %v2572_v50 = vcombine.low %v1415_v31, %v1419_v33  ;;  %v2573_v12 = vcombine.low %v1423_v34, %v1427_v38 }
 0x264   : > { %v2574_v53 = vcombine.low %v1431_v39, %v1435_v42  ;;  %v2575_v54 = vcombine.low %v1439_v43, %v1443_v44  ;;  %v1767_v55 = vrot.slane %v5310_v11, %v5136_v61  ;;  %v1771_v51 = vrot.slane %v5310_v11, %v5139_v63 }
 0x265   : > { %v2717_v24 = vrot.slane %v2703_v45, %v5162_v9  ;;  %v2582_v57 = vrot.slane %v2572_v50, %v5162_v9  ;;  %v2589_v48 = vrot.slane %v2573_v12, %v5162_v9  ;;  %v1775_v1 = vrot.slane %v5310_v11, %v5142_v62 }
 0x266   : > { %v2596_v7 = vrot.slane %v2574_v53, %v5162_v9  ;;  %v2603_v8 = vrot.slane %v2575_v54, %v5162_v9  ;;  %v1779_v10 = vrot.slane %v5310_v11, %v5145_v0  ;;  %v1783_v6 = vrot.slane %v5310_v11, %v5148_v2 }
 0x267   : > { %v2718_v18 = vcombine.low %v2710_v47, %v2717_v24  ;;  %v2604_v52 = vcombine.low %v2582_v57, %v2589_v48  ;;  %v1787_v21 = vrot.slane %v5310_v11, %v5151_v3  ;;  %v1791_v22 = vrot.slane %v5310_v11, %v5154_v4 }
 0x268   : > { %v2605_v23 = vcombine.low %v2596_v7, %v2603_v8  ;;  %v1795_v28 = vrot.slane %v5310_v11, %v5157_v5  ;;  %v3111_v29 = vcombine.low %v1767_v55, %v1771_v51  ;;  %v3112_v30 = vcombine.low %v1775_v1, %v1779_v10 }
 0x269   : > { %3779 = vperm.xlu1 %4479, %v2718_v18   ;;  %v2612_v19 = vrot.slane %v2604_v52, %v5162_v9  ;;  %v3113_v27 = vcombine.low %v1783_v6, %v1787_v21  ;;  %v5462_v31 = vadd.f32 %v5133_v59, %v1079_v14  ;;  %v5465_v33 = vadd.f32 %v5133_v59, %v1081_v16 }
 0x26a   : > { %v2619_v34 = vrot.slane %v2605_v23, %v5162_v9  ;;  %v3114_v35 = vcombine.low %v1791_v22, %v1795_v28  ;;  %v3121_v36 = vrot.slane %v3111_v29, %v5162_v9  ;;  %v3128_v41 = vrot.slane %v3112_v30, %v5162_v9  ;;  %v1075_v22 = vpop.xlane.xlu0 %1074  ;;  %v1077_v23 = vpop.xlane.xlu1 %1076 }
 0x26b   : > { %v3135_v11 = vrot.slane %v3113_v27, %v5162_v9  ;;  %v1511_v38 = vrot.slane %v5226_v32, %v5136_v61  ;;  %v1515_v39 = vrot.slane %v5226_v32, %v5139_v63  ;;  %v1519_v42 = vrot.slane %v5226_v32, %v5142_v62 }
 0x26c   : > { %v2620_v43 = vcombine.low %v2612_v19, %v2619_v34  ;;  %v3142_v44 = vrot.slane %v3114_v35, %v5162_v9  ;;  %v3143_v45 = vcombine.low %v3121_v36, %v3128_v41  ;;  %v1523_v47 = vrot.slane %v5226_v32, %v5145_v0 }
 0x26d   : > { %v1527_v50 = vrot.slane %v5226_v32, %v5148_v2  ;;  %v1531_v12 = vrot.slane %v5226_v32, %v5151_v3  ;;  %v1535_v53 = vrot.slane %v5226_v32, %v5154_v4  ;;  %v1539_v54 = vrot.slane %v5226_v32, %v5157_v5 }
 0x26e   : > { %3773 = vperm.xlu1 %4479, %v2620_v43   ;;  %v3144_v55 = vcombine.low %v3135_v11, %v3142_v44  ;;  %v3151_v51 = vrot.slane %v3143_v45, %v5162_v9  ;;  %v2719_v24 = vcombine.low %v1511_v38, %v1515_v39  ;;  %v2720_v57 = vcombine.low %v1519_v42, %v1523_v47 }
 0x26f   : > { %v2721_v48 = vcombine.low %v1527_v50, %v1531_v12  ;;  %v2722_v1 = vcombine.low %v1535_v53, %v1539_v54  ;;  %v1703_v7 = vrot.slane %v5360_v17, %v5136_v61  ;;  %v1707_v8 = vrot.slane %v5360_v17, %v5139_v63 }
 0x270   : > { %v3158_v10 = vrot.slane %v3144_v55, %v5162_v9  ;;  %v2729_v6 = vrot.slane %v2719_v24, %v5162_v9  ;;  %v2736_v32 = vrot.slane %v2720_v57, %v5162_v9  ;;  %v1711_v14 = vrot.slane %v5360_v17, %v5142_v62 }
 0x271   : > { %v2743_v16 = vrot.slane %v2721_v48, %v5162_v9  ;;  %v2750_v18 = vrot.slane %v2722_v1, %v5162_v9  ;;  %v1715_v52 = vrot.slane %v5360_v17, %v5145_v0  ;;  %v1719_v21 = vrot.slane %v5360_v17, %v5148_v2 }
 0x272   : > { %v3159_v28 = vcombine.low %v3151_v51, %v3158_v10  ;;  %v2751_v29 = vcombine.low %v2729_v6, %v2736_v32  ;;  %v1723_v30 = vrot.slane %v5360_v17, %v5151_v3  ;;  %v1727_v19 = vrot.slane %v5360_v17, %v5154_v4 }
 0x273   : > { %v2752_v27 = vcombine.low %v2743_v16, %v2750_v18  ;;  %v1731_v34 = vrot.slane %v5360_v17, %v5157_v5  ;;  %v3013_v35 = vcombine.low %v1703_v7, %v1707_v8  ;;  %v3014_v36 = vcombine.low %v1711_v14, %v1715_v52 }
 0x274   : > { %3806 = vperm.xlu0 %4480, %v3159_v28   ;;  %v2759_v41 = vrot.slane %v2751_v29, %v5162_v9  ;;  %v3015_v11 = vcombine.low %v1719_v21, %v1723_v30  ;;  %v5512_v38 = vadd.f32 %v5133_v59, %v1075_v22  ;;  %v5515_v39 = vadd.f32 %v5133_v59, %v1077_v23 }
 0x275   : > { %v2766_v42 = vrot.slane %v2752_v27, %v5162_v9  ;;  %v3016_v43 = vcombine.low %v1727_v19, %v1731_v34  ;;  %v3023_v44 = vrot.slane %v3013_v35, %v5162_v9  ;;  %v3030_v45 = vrot.slane %v3014_v36, %v5162_v9  ;;  %v1083_v19 = vpop.xlane.xlu0 %1082  ;;  %v1089_v27 = vpop.xlane.xlu1 %1088 }
 0x276   : > { %v3037_v17 = vrot.slane %v3015_v11, %v5162_v9  ;;  %v1543_v47 = vrot.slane %v5285_v37, %v5136_v61  ;;  %v1547_v50 = vrot.slane %v5285_v37, %v5139_v63  ;;  %v1551_v12 = vrot.slane %v5285_v37, %v5142_v62 }
 0x277   : > { %v2767_v53 = vcombine.low %v2759_v41, %v2766_v42  ;;  %v3044_v54 = vrot.slane %v3016_v43, %v5162_v9  ;;  %v3045_v55 = vcombine.low %v3023_v44, %v3030_v45  ;;  %v1555_v51 = vrot.slane %v5285_v37, %v5145_v0 }
 0x278   : > { %v1559_v24 = vrot.slane %v5285_v37, %v5148_v2  ;;  %v1563_v57 = vrot.slane %v5285_v37, %v5151_v3  ;;  %v1567_v48 = vrot.slane %v5285_v37, %v5154_v4  ;;  %v1571_v1 = vrot.slane %v5285_v37, %v5157_v5 }
 0x279   : > { %3782 = vperm.xlu1 %4479, %v2767_v53   ;;  %v3046_v7 = vcombine.low %v3037_v17, %v3044_v54  ;;  %v3053_v8 = vrot.slane %v3045_v55, %v5162_v9  ;;  %v2768_v10 = vcombine.low %v1543_v47, %v1547_v50  ;;  %v2769_v6 = vcombine.low %v1551_v12, %v1555_v51 }
 0x27a   : > { %v2770_v32 = vcombine.low %v1559_v24, %v1563_v57  ;;  %v2771_v14 = vcombine.low %v1567_v48, %v1571_v1  ;;  %v1895_v16 = vrot.slane %v5389_v49, %v5136_v61  ;;  %v1899_v18 = vrot.slane %v5389_v49, %v5139_v63 }
 0x27b   : > { %v3060_v52 = vrot.slane %v3046_v7, %v5162_v9  ;;  %v2778_v21 = vrot.slane %v2768_v10, %v5162_v9  ;;  %v2785_v37 = vrot.slane %v2769_v6, %v5162_v9  ;;  %v1903_v22 = vrot.slane %v5389_v49, %v5142_v62 }
 0x27c   : > { %v2792_v23 = vrot.slane %v2770_v32, %v5162_v9  ;;  %v2799_v28 = vrot.slane %v2771_v14, %v5162_v9  ;;  %v1907_v29 = vrot.slane %v5389_v49, %v5145_v0  ;;  %v1911_v30 = vrot.slane %v5389_v49, %v5148_v2 }
 0x27d   : > { %v3061_v34 = vcombine.low %v3053_v8, %v3060_v52  ;;  %v2800_v35 = vcombine.low %v2778_v21, %v2785_v37  ;;  %v1915_v36 = vrot.slane %v5389_v49, %v5151_v3  ;;  %v1919_v41 = vrot.slane %v5389_v49, %v5154_v4 }
 0x27e   : > { %v2801_v11 = vcombine.low %v2792_v23, %v2799_v28  ;;  %v1923_v42 = vrot.slane %v5389_v49, %v5157_v5  ;;  %v3307_v43 = vcombine.low %v1895_v16, %v1899_v18  ;;  %v3308_v44 = vcombine.low %v1903_v22, %v1907_v29 }
 0x27f   : > { %3800 = vperm.xlu0 %4480, %v3061_v34   ;;  %v2808_v45 = vrot.slane %v2800_v35, %v5162_v9  ;;  %v3309_v17 = vcombine.low %v1911_v30, %v1915_v36  ;;  %v5562_v47 = vadd.f32 %v5133_v59, %v1083_v19  ;;  %v5565_v50 = vadd.f32 %v5133_v59, %v1089_v27 }
 0x280   : > { %v2815_v12 = vrot.slane %v2801_v11, %v5162_v9  ;;  %v3310_v53 = vcombine.low %v1919_v41, %v1923_v42  ;;  %v3317_v54 = vrot.slane %v3307_v43, %v5162_v9  ;;  %v3324_v55 = vrot.slane %v3308_v44, %v5162_v9  ;;  %v1087_v41 = vpop.xlane.xlu0 %1086  ;;  %v1085_v11 = vpop.xlane.xlu1 %1084 }
 0x281   : > { %v3331_v49 = vrot.slane %v3309_v17, %v5162_v9  ;;  %v1575_v51 = vrot.slane %v5289_v40, %v5136_v61  ;;  %v1579_v24 = vrot.slane %v5289_v40, %v5139_v63  ;;  %v1583_v57 = vrot.slane %v5289_v40, %v5142_v62 }
 0x282   : > { %v2816_v48 = vcombine.low %v2808_v45, %v2815_v12  ;;  %v3338_v1 = vrot.slane %v3310_v53, %v5162_v9  ;;  %v3339_v7 = vcombine.low %v3317_v54, %v3324_v55  ;;  %v1587_v8 = vrot.slane %v5289_v40, %v5145_v0 }
 0x283   : > { %v1591_v10 = vrot.slane %v5289_v40, %v5148_v2  ;;  %v1595_v6 = vrot.slane %v5289_v40, %v5151_v3  ;;  %v1599_v32 = vrot.slane %v5289_v40, %v5154_v4  ;;  %v1603_v14 = vrot.slane %v5289_v40, %v5157_v5 }
 0x284   : > { %3785 = vperm.xlu1 %4479, %v2816_v48   ;;  %v3340_v16 = vcombine.low %v3331_v49, %v3338_v1  ;;  %v3347_v18 = vrot.slane %v3339_v7, %v5162_v9  ;;  %v2817_v52 = vcombine.low %v1575_v51, %v1579_v24  ;;  %v2818_v21 = vcombine.low %v1583_v57, %v1587_v8 }
 0x285   : > { %v2819_v37 = vcombine.low %v1591_v10, %v1595_v6  ;;  %v2820_v22 = vcombine.low %v1599_v32, %v1603_v14  ;;  %v1831_v23 = vrot.slane %v5415_v26, %v5136_v61  ;;  %v1835_v28 = vrot.slane %v5415_v26, %v5139_v63 }
 0x286   : > { %v3354_v29 = vrot.slane %v3340_v16, %v5162_v9  ;;  %v2827_v30 = vrot.slane %v2817_v52, %v5162_v9  ;;  %v2834_v40 = vrot.slane %v2818_v21, %v5162_v9  ;;  %v1839_v19 = vrot.slane %v5415_v26, %v5142_v62 }
 0x287   : > { %v2841_v27 = vrot.slane %v2819_v37, %v5162_v9  ;;  %v2848_v34 = vrot.slane %v2820_v22, %v5162_v9  ;;  %v1843_v35 = vrot.slane %v5415_v26, %v5145_v0  ;;  %v1847_v36 = vrot.slane %v5415_v26, %v5148_v2 }
 0x288   : > { %v3355_v42 = vcombine.low %v3347_v18, %v3354_v29  ;;  %v2849_v43 = vcombine.low %v2827_v30, %v2834_v40  ;;  %v1851_v44 = vrot.slane %v5415_v26, %v5151_v3  ;;  %v1855_v45 = vrot.slane %v5415_v26, %v5154_v4 }
 0x289   : > { %v2850_v17 = vcombine.low %v2841_v27, %v2848_v34  ;;  %v1859_v12 = vrot.slane %v5415_v26, %v5157_v5  ;;  %v3209_v53 = vcombine.low %v1831_v23, %v1835_v28  ;;  %v3210_v54 = vcombine.low %v1839_v19, %v1843_v35 }
 0x28a   : > { %3818 = vperm.xlu0 %4480, %v3355_v42   ;;  %v2857_v55 = vrot.slane %v2849_v43, %v5162_v9  ;;  %v3211_v49 = vcombine.low %v1847_v36, %v1851_v44  ;;  %v5612_v51 = vadd.f32 %v5133_v59, %v1087_v41  ;;  %v5615_v24 = vadd.f32 %v5133_v59, %v1085_v11 }
 0x28b   : > { %v2864_v57 = vrot.slane %v2850_v17, %v5162_v9  ;;  %v3212_v48 = vcombine.low %v1855_v45, %v1859_v12  ;;  %v3219_v1 = vrot.slane %v3209_v53, %v5162_v9  ;;  %v3226_v7 = vrot.slane %v3210_v54, %v5162_v9 }
 0x28c   : > { %v3233_v26 = vrot.slane %v3211_v49, %v5162_v9  ;;  %v1735_v8 = vrot.slane %v5306_v60, %v5136_v61  ;;  %v1739_v10 = vrot.slane %v5306_v60, %v5139_v63  ;;  %v1743_v6 = vrot.slane %v5306_v60, %v5142_v62 }
 0x28d   : > { %v2865_v59 = vcombine.low %v2857_v55, %v2864_v57  ;;  %v3240_v32 = vrot.slane %v3212_v48, %v5162_v9  ;;  %v3241_v14 = vcombine.low %v3219_v1, %v3226_v7  ;;  %v1747_v16 = vrot.slane %v5306_v60, %v5145_v0 }
 0x28e   : > { %v1751_v18 = vrot.slane %v5306_v60, %v5148_v2  ;;  %v1755_v52 = vrot.slane %v5306_v60, %v5151_v3  ;;  %v1759_v21 = vrot.slane %v5306_v60, %v5154_v4  ;;  %v1763_v37 = vrot.slane %v5306_v60, %v5157_v5 }
 0x28f   : > { %3788 = vperm.xlu1 %4479, %v2865_v59   ;;  %v3242_v22 = vcombine.low %v3233_v26, %v3240_v32  ;;  %v3249_v23 = vrot.slane %v3241_v14, %v5162_v9  ;;  %v3062_v28 = vcombine.low %v1735_v8, %v1739_v10  ;;  %v3063_v29 = vcombine.low %v1743_v6, %v1747_v16 }
 0x290   : > { %v3064_v30 = vcombine.low %v1751_v18, %v1755_v52  ;;  %v3065_v40 = vcombine.low %v1759_v21, %v1763_v37  ;;  %v1991_v19 = vrot.slane %v5462_v31, %v5136_v61  ;;  %v1995_v27 = vrot.slane %v5462_v31, %v5139_v63 }
 0x291   : > { %v3256_v34 = vrot.slane %v3242_v22, %v5162_v9  ;;  %v3072_v35 = vrot.slane %v3062_v28, %v5162_v9  ;;  %v3079_v60 = vrot.slane %v3063_v29, %v5162_v9  ;;  %v1999_v36 = vrot.slane %v5462_v31, %v5142_v62 }
 0x292   : > { %v3086_v41 = vrot.slane %v3064_v30, %v5162_v9  ;;  %v3093_v11 = vrot.slane %v3065_v40, %v5162_v9  ;;  %v2003_v42 = vrot.slane %v5462_v31, %v5145_v0  ;;  %v2007_v43 = vrot.slane %v5462_v31, %v5148_v2 }
 0x293   : > { %v3257_v44 = vcombine.low %v3249_v23, %v3256_v34  ;;  %v3094_v45 = vcombine.low %v3072_v35, %v3079_v60  ;;  %v2011_v17 = vrot.slane %v5462_v31, %v5151_v3  ;;  %v2015_v12 = vrot.slane %v5462_v31, %v5154_v4 }
 0x294   : > { %v3095_v53 = vcombine.low %v3086_v41, %v3093_v11  ;;  %v2019_v54 = vrot.slane %v5462_v31, %v5157_v5  ;;  %v3454_v55 = vcombine.low %v1991_v19, %v1995_v27  ;;  %v3455_v49 = vcombine.low %v1999_v36, %v2003_v42 }
 0x295   : > { %3812 = vperm.xlu0 %4480, %v3257_v44   ;;  %v3102_v57 = vrot.slane %v3094_v45, %v5162_v9  ;;  %v3456_v48 = vcombine.low %v2007_v43, %v2011_v17  ;;  %v1671_v1 = vrot.slane %v5355_v13, %v5136_v61  ;;  %v1675_v7 = vrot.slane %v5355_v13, %v5139_v63 }
 0x296   : > { %v3109_v26 = vrot.slane %v3095_v53, %v5162_v9  ;;  %v3457_v8 = vcombine.low %v2015_v12, %v2019_v54  ;;  %v3464_v10 = vrot.slane %v3454_v55, %v5162_v9  ;;  %v3471_v6 = vrot.slane %v3455_v49, %v5162_v9 }
 0x297   : > { %v3478_v31 = vrot.slane %v3456_v48, %v5162_v9  ;;  %v1679_v59 = vrot.slane %v5355_v13, %v5142_v62  ;;  %v1683_v32 = vrot.slane %v5355_v13, %v5145_v0  ;;  %v1687_v14 = vrot.slane %v5355_v13, %v5148_v2 }
 0x298   : > { %v3110_v16 = vcombine.low %v3102_v57, %v3109_v26  ;;  %v3485_v18 = vrot.slane %v3457_v8, %v5162_v9  ;;  %v3486_v52 = vcombine.low %v3464_v10, %v3471_v6  ;;  %v1691_v21 = vrot.slane %v5355_v13, %v5151_v3 }
 0x299   : > { %v1695_v37 = vrot.slane %v5355_v13, %v5154_v4  ;;  %v1699_v22 = vrot.slane %v5355_v13, %v5157_v5  ;;  %v2964_v23 = vcombine.low %v1671_v1, %v1675_v7  ;;  %v2965_v28 = vcombine.low %v1679_v59, %v1683_v32 }
 0x29a   : > { %3803 = vperm.xlu1 %4479, %v3110_v16   ;;  %v3487_v29 = vcombine.low %v3478_v31, %v3485_v18  ;;  %v3494_v30 = vrot.slane %v3486_v52, %v5162_v9  ;;  %v2966_v40 = vcombine.low %v1687_v14, %v1691_v21  ;;  %v2023_v19 = vrot.slane %v5465_v33, %v5136_v61 }
 0x29b   : > { %v2967_v27 = vcombine.low %v1695_v37, %v1699_v22  ;;  %v2974_v34 = vrot.slane %v2964_v23, %v5162_v9  ;;  %v2981_v35 = vrot.slane %v2965_v28, %v5162_v9  ;;  %v2027_v60 = vrot.slane %v5465_v33, %v5139_v63 }
 0x29c   : > { %v3501_v13 = vrot.slane %v3487_v29, %v5162_v9  ;;  %v2988_v36 = vrot.slane %v2966_v40, %v5162_v9  ;;  %v2031_v41 = vrot.slane %v5465_v33, %v5142_v62  ;;  %v2035_v11 = vrot.slane %v5465_v33, %v5145_v0 }
 0x29d   : > { %v2995_v42 = vrot.slane %v2967_v27, %v5162_v9  ;;  %v2996_v43 = vcombine.low %v2974_v34, %v2981_v35  ;;  %v2039_v44 = vrot.slane %v5465_v33, %v5148_v2  ;;  %v2043_v45 = vrot.slane %v5465_v33, %v5151_v3 }
 0x29e   : > { %v3502_v17 = vcombine.low %v3494_v30, %v3501_v13  ;;  %v2047_v12 = vrot.slane %v5465_v33, %v5154_v4  ;;  %v2051_v53 = vrot.slane %v5465_v33, %v5157_v5  ;;  %v3503_v54 = vcombine.low %v2023_v19, %v2027_v60 }
 0x29f   : > { %v2997_v55 = vcombine.low %v2988_v36, %v2995_v42  ;;  %v3004_v49 = vrot.slane %v2996_v43, %v5162_v9  ;;  %v3504_v57 = vcombine.low %v2031_v41, %v2035_v11  ;;  %v3505_v48 = vcombine.low %v2039_v44, %v2043_v45 }
 0x2a0   : > { %3827 = vperm.xlu0 %4480, %v3502_v17   ;;  %v3506_v1 = vcombine.low %v2047_v12, %v2051_v53  ;;  %v3513_v7 = vrot.slane %v3503_v54, %v5162_v9  ;;  %v1863_v26 = vrot.slane %v5384_v46, %v5136_v61  ;;  %v1867_v8 = vrot.slane %v5384_v46, %v5139_v63 }
 0x2a1   : > { %v3011_v10 = vrot.slane %v2997_v55, %v5162_v9  ;;  %v3520_v33 = vrot.slane %v3504_v57, %v5162_v9  ;;  %v3527_v6 = vrot.slane %v3505_v48, %v5162_v9  ;;  %v1871_v31 = vrot.slane %v5384_v46, %v5142_v62 }
 0x2a2   : > { %v3534_v59 = vrot.slane %v3506_v1, %v5162_v9  ;;  %v1875_v32 = vrot.slane %v5384_v46, %v5145_v0  ;;  %v1879_v14 = vrot.slane %v5384_v46, %v5148_v2  ;;  %v1883_v16 = vrot.slane %v5384_v46, %v5151_v3 }
 0x2a3   : > { %v3012_v18 = vcombine.low %v3004_v49, %v3011_v10  ;;  %v3535_v52 = vcombine.low %v3513_v7, %v3520_v33  ;;  %v1887_v21 = vrot.slane %v5384_v46, %v5154_v4  ;;  %v1891_v37 = vrot.slane %v5384_v46, %v5157_v5 }
 0x2a4   : > { %v3536_v22 = vcombine.low %v3527_v6, %v3534_v59  ;;  %v3258_v23 = vcombine.low %v1863_v26, %v1867_v8  ;;  %v3259_v28 = vcombine.low %v1871_v31, %v1875_v32  ;;  %v3260_v29 = vcombine.low %v1879_v14, %v1883_v16 }
 0x2a5   : > { %3797 = vperm.xlu1 %4479, %v3012_v18   ;;  %v3543_v30 = vrot.slane %v3535_v52, %v5162_v9  ;;  %v3261_v40 = vcombine.low %v1887_v21, %v1891_v37  ;;  %v1959_v19 = vrot.slane %v5515_v39, %v5136_v61  ;;  %v1963_v27 = vrot.slane %v5515_v39, %v5139_v63 }
 0x2a6   : > { %v3550_v34 = vrot.slane %v3536_v22, %v5162_v9  ;;  %v3268_v35 = vrot.slane %v3258_v23, %v5162_v9  ;;  %v3275_v46 = vrot.slane %v3259_v28, %v5162_v9  ;;  %v3282_v60 = vrot.slane %v3260_v29, %v5162_v9 }
 0x2a7   : > { %v3289_v13 = vrot.slane %v3261_v40, %v5162_v9  ;;  %v1967_v36 = vrot.slane %v5515_v39, %v5142_v62  ;;  %v1971_v41 = vrot.slane %v5515_v39, %v5145_v0  ;;  %v1975_v11 = vrot.slane %v5515_v39, %v5148_v2 }
 0x2a8   : > { %v3551_v42 = vcombine.low %v3543_v30, %v3550_v34  ;;  %v3290_v43 = vcombine.low %v3268_v35, %v3275_v46  ;;  %v1979_v44 = vrot.slane %v5515_v39, %v5151_v3  ;;  %v1983_v45 = vrot.slane %v5515_v39, %v5154_v4 }
 0x2a9   : > { %v3291_v17 = vcombine.low %v3282_v60, %v3289_v13  ;;  %v1987_v12 = vrot.slane %v5515_v39, %v5157_v5  ;;  %v3405_v53 = vcombine.low %v1959_v19, %v1963_v27  ;;  %v3406_v54 = vcombine.low %v1967_v36, %v1971_v41 }
 0x2aa   : > { %3830 = vperm.xlu0 %4480, %v3551_v42   ;;  %v3298_v55 = vrot.slane %v3290_v43, %v5162_v9  ;;  %v3407_v49 = vcombine.low %v1975_v11, %v1979_v44  ;;  %v1799_v57 = vrot.slane %v5412_v25, %v5136_v61  ;;  %v1803_v48 = vrot.slane %v5412_v25, %v5139_v63 }
 0x2ab   : > { %v3305_v1 = vrot.slane %v3291_v17, %v5162_v9  ;;  %v3408_v7 = vcombine.low %v1983_v45, %v1987_v12  ;;  %v3415_v26 = vrot.slane %v3405_v53, %v5162_v9  ;;  %v3422_v8 = vrot.slane %v3406_v54, %v5162_v9 }
 0x2ac   : > { %v3429_v39 = vrot.slane %v3407_v49, %v5162_v9  ;;  %v1807_v10 = vrot.slane %v5412_v25, %v5142_v62  ;;  %v1811_v33 = vrot.slane %v5412_v25, %v5145_v0  ;;  %v1815_v6 = vrot.slane %v5412_v25, %v5148_v2 }
 0x2ad   : > { %v3306_v31 = vcombine.low %v3298_v55, %v3305_v1  ;;  %v3436_v59 = vrot.slane %v3408_v7, %v5162_v9  ;;  %v3437_v32 = vcombine.low %v3415_v26, %v3422_v8  ;;  %v1819_v14 = vrot.slane %v5412_v25, %v5151_v3 }
 0x2ae   : > { %v1823_v16 = vrot.slane %v5412_v25, %v5154_v4  ;;  %v1827_v18 = vrot.slane %v5412_v25, %v5157_v5  ;;  %v3160_v52 = vcombine.low %v1799_v57, %v1803_v48  ;;  %v3161_v21 = vcombine.low %v1807_v10, %v1811_v33 }
 0x2af   : > { %3815 = vperm.xlu1 %4479, %v3306_v31   ;;  %v3438_v37 = vcombine.low %v3429_v39, %v3436_v59  ;;  %v3445_v22 = vrot.slane %v3437_v32, %v5162_v9  ;;  %v3162_v23 = vcombine.low %v1815_v6, %v1819_v14  ;;  %v2119_v28 = vrot.slane %v5612_v51, %v5136_v61 }
 0x2b0   : > { %v3163_v29 = vcombine.low %v1823_v16, %v1827_v18  ;;  %v3170_v30 = vrot.slane %v3160_v52, %v5162_v9  ;;  %v3177_v40 = vrot.slane %v3161_v21, %v5162_v9  ;;  %v2123_v19 = vrot.slane %v5612_v51, %v5139_v63 }
 0x2b1   : > { %v3452_v25 = vrot.slane %v3438_v37, %v5162_v9  ;;  %v3184_v27 = vrot.slane %v3162_v23, %v5162_v9  ;;  %v2127_v34 = vrot.slane %v5612_v51, %v5142_v62  ;;  %v2131_v35 = vrot.slane %v5612_v51, %v5145_v0 }
 0x2b2   : > { %v3191_v46 = vrot.slane %v3163_v29, %v5162_v9  ;;  %v3192_v60 = vcombine.low %v3170_v30, %v3177_v40  ;;  %v2135_v13 = vrot.slane %v5612_v51, %v5148_v2  ;;  %v2139_v36 = vrot.slane %v5612_v51, %v5151_v3 }
 0x2b3   : > { %v3453_v41 = vcombine.low %v3445_v22, %v3452_v25  ;;  %v2143_v11 = vrot.slane %v5612_v51, %v5154_v4  ;;  %v2147_v42 = vrot.slane %v5612_v51, %v5157_v5  ;;  %v3650_v43 = vcombine.low %v2119_v28, %v2123_v19 }
 0x2b4   : > { %v3193_v44 = vcombine.low %v3184_v27, %v3191_v46  ;;  %v3200_v45 = vrot.slane %v3192_v60, %v5162_v9  ;;  %v3651_v17 = vcombine.low %v2127_v34, %v2131_v35  ;;  %v3652_v12 = vcombine.low %v2135_v13, %v2139_v36 }
 0x2b5   : > { %3824 = vperm.xlu0 %4480, %v3453_v41   ;;  %v3653_v53 = vcombine.low %v2143_v11, %v2147_v42  ;;  %v3660_v54 = vrot.slane %v3650_v43, %v5162_v9  ;;  %v1927_v55 = vrot.slane %v5512_v38, %v5136_v61  ;;  %v1931_v49 = vrot.slane %v5512_v38, %v5139_v63 }
 0x2b6   : > { %v3207_v57 = vrot.slane %v3193_v44, %v5162_v9  ;;  %v3667_v51 = vrot.slane %v3651_v17, %v5162_v9  ;;  %v3674_v48 = vrot.slane %v3652_v12, %v5162_v9  ;;  %v1935_v1 = vrot.slane %v5512_v38, %v5142_v62 }
 0x2b7   : > { %v3681_v7 = vrot.slane %v3653_v53, %v5162_v9  ;;  %v1939_v26 = vrot.slane %v5512_v38, %v5145_v0  ;;  %v1943_v8 = vrot.slane %v5512_v38, %v5148_v2  ;;  %v1947_v39 = vrot.slane %v5512_v38, %v5151_v3 }
 0x2b8   : > { %v3208_v10 = vcombine.low %v3200_v45, %v3207_v57  ;;  %v3682_v33 = vcombine.low %v3660_v54, %v3667_v51  ;;  %v1951_v6 = vrot.slane %v5512_v38, %v5154_v4  ;;  %v1955_v31 = vrot.slane %v5512_v38, %v5157_v5 }
 0x2b9   : > { %v3683_v59 = vcombine.low %v3674_v48, %v3681_v7  ;;  %v3356_v32 = vcombine.low %v1927_v55, %v1931_v49  ;;  %v3357_v14 = vcombine.low %v1935_v1, %v1939_v26  ;;  %v3358_v16 = vcombine.low %v1943_v8, %v1947_v39 }
 0x2ba   : > { %3809 = vperm.xlu1 %4479, %v3208_v10   ;;  %v3690_v18 = vrot.slane %v3682_v33, %v5162_v9  ;;  %v3359_v52 = vcombine.low %v1951_v6, %v1955_v31  ;;  %v2055_v21 = vrot.slane %v5562_v47, %v5136_v61  ;;  %v2059_v37 = vrot.slane %v5562_v47, %v5139_v63 }
 0x2bb   : > { %v3697_v22 = vrot.slane %v3683_v59, %v5162_v9  ;;  %v3366_v23 = vrot.slane %v3356_v32, %v5162_v9  ;;  %v3373_v38 = vrot.slane %v3357_v14, %v5162_v9  ;;  %v3380_v28 = vrot.slane %v3358_v16, %v5162_v9 }
 0x2bc   : > { %v3387_v29 = vrot.slane %v3359_v52, %v5162_v9  ;;  %v2063_v30 = vrot.slane %v5562_v47, %v5142_v62  ;;  %v2067_v40 = vrot.slane %v5562_v47, %v5145_v0  ;;  %v2071_v19 = vrot.slane %v5562_v47, %v5148_v2 }
 0x2bd   : > { %v3698_v25 = vcombine.low %v3690_v18, %v3697_v22  ;;  %v3388_v27 = vcombine.low %v3366_v23, %v3373_v38  ;;  %v2075_v34 = vrot.slane %v5562_v47, %v5151_v3  ;;  %v2079_v35 = vrot.slane %v5562_v47, %v5154_v4 }
 0x2be   : > { %v3389_v46 = vcombine.low %v3380_v28, %v3387_v29  ;;  %v2083_v60 = vrot.slane %v5562_v47, %v5157_v5  ;;  %v3552_v13 = vcombine.low %v2055_v21, %v2059_v37  ;;  %v3553_v36 = vcombine.low %v2063_v30, %v2067_v40 }
 0x2bf   : > { %3839 = vperm.xlu0 %4480, %v3698_v25   ;;  %v3396_v41 = vrot.slane %v3388_v27, %v5162_v9  ;;  %v3554_v11 = vcombine.low %v2071_v19, %v2075_v34  ;;  %v1607_v42 = vrot.slane %v5263_v15, %v5136_v61  ;;  %v1611_v43 = vrot.slane %v5263_v15, %v5139_v63 }
 0x2c0   : > { %v3403_v44 = vrot.slane %v3389_v46, %v5162_v9  ;;  %v3555_v45 = vcombine.low %v2079_v35, %v2083_v60  ;;  %v3562_v17 = vrot.slane %v3552_v13, %v5162_v9  ;;  %v3569_v12 = vrot.slane %v3553_v36, %v5162_v9 }
 0x2c1   : > { %v3576_v47 = vrot.slane %v3554_v11, %v5162_v9  ;;  %v1615_v53 = vrot.slane %v5263_v15, %v5142_v62  ;;  %v1619_v54 = vrot.slane %v5263_v15, %v5145_v0  ;;  %v1623_v55 = vrot.slane %v5263_v15, %v5148_v2 }
 0x2c2   : > { %v3404_v49 = vcombine.low %v3396_v41, %v3403_v44  ;;  %v3583_v57 = vrot.slane %v3555_v45, %v5162_v9  ;;  %v3584_v51 = vcombine.low %v3562_v17, %v3569_v12  ;;  %v1627_v48 = vrot.slane %v5263_v15, %v5151_v3 }
 0x2c3   : > { %v1631_v1 = vrot.slane %v5263_v15, %v5154_v4  ;;  %v1635_v7 = vrot.slane %v5263_v15, %v5157_v5  ;;  %v2866_v26 = vcombine.low %v1607_v42, %v1611_v43  ;;  %v2867_v8 = vcombine.low %v1615_v53, %v1619_v54 }
 0x2c4   : > { %3821 = vperm.xlu1 %4479, %v3404_v49   ;;  %v3585_v39 = vcombine.low %v3576_v47, %v3583_v57  ;;  %v3592_v10 = vrot.slane %v3584_v51, %v5162_v9  ;;  %v2868_v33 = vcombine.low %v1623_v55, %v1627_v48  ;;  %v2087_v6 = vrot.slane %v5615_v24, %v5136_v61 }
 0x2c5   : > { %v2869_v31 = vcombine.low %v1631_v1, %v1635_v7  ;;  %v2876_v59 = vrot.slane %v2866_v26, %v5162_v9  ;;  %v2883_v32 = vrot.slane %v2867_v8, %v5162_v9  ;;  %v2091_v14 = vrot.slane %v5615_v24, %v5139_v63 }
 0x2c6   : > { %v3599_v15 = vrot.slane %v3585_v39, %v5162_v9  ;;  %v2890_v16 = vrot.slane %v2868_v33, %v5162_v9  ;;  %v2095_v18 = vrot.slane %v5615_v24, %v5142_v62  ;;  %v2099_v52 = vrot.slane %v5615_v24, %v5145_v0 }
 0x2c7   : > { %v2897_v21 = vrot.slane %v2869_v31, %v5162_v9  ;;  %v2898_v37 = vcombine.low %v2876_v59, %v2883_v32  ;;  %v2103_v22 = vrot.slane %v5615_v24, %v5148_v2  ;;  %v2107_v23 = vrot.slane %v5615_v24, %v5151_v3 }
 0x2c8   : > { %v3600_v38 = vcombine.low %v3592_v10, %v3599_v15  ;;  %v2111_v28 = vrot.slane %v5615_v24, %v5154_v4  ;;  %v2115_v29 = vrot.slane %v5615_v24, %v5157_v5  ;;  %v3601_v30 = vcombine.low %v2087_v6, %v2091_v14 }
 0x2c9   : > { %v2899_v40 = vcombine.low %v2890_v16, %v2897_v21  ;;  %v2906_v19 = vrot.slane %v2898_v37, %v5162_v9  ;;  %v3602_v25 = vcombine.low %v2095_v18, %v2099_v52  ;;  %v3603_v27 = vcombine.low %v2103_v22, %v2107_v23 }
 0x2ca   : > { %3833 = vperm.xlu0 %4480, %v3600_v38   ;;  %v3604_v34 = vcombine.low %v2111_v28, %v2115_v29  ;;  %v3611_v35 = vrot.slane %v3601_v30, %v5162_v9  ;;  %v1639_v46 = vrot.slane %v5268_v20, %v5136_v61  ;;  %v1643_v60 = vrot.slane %v5268_v20, %v5139_v63  ;;  %v5932_v28 = vpop.permute.xlu1 %3755 }
 0x2cb   : > { %v2913_v13 = vrot.slane %v2899_v40, %v5162_v9  ;;  %v3618_v24 = vrot.slane %v3602_v25, %v5162_v9  ;;  %v3625_v36 = vrot.slane %v3603_v27, %v5162_v9  ;;  %v1647_v41 = vrot.slane %v5268_v20, %v5142_v62 }
 0x2cc   : > { %v3632_v11 = vrot.slane %v3604_v34, %v5162_v9  ;;  %v1651_v42 = vrot.slane %v5268_v20, %v5145_v0  ;;  %v1655_v43 = vrot.slane %v5268_v20, %v5148_v2  ;;  %v1659_v44 = vrot.slane %v5268_v20, %v5151_v3 }
 0x2cd   : > { %v2914_v45 = vcombine.low %v2906_v19, %v2913_v13  ;;  %v3633_v17 = vcombine.low %v3611_v35, %v3618_v24  ;;  %v1663_v12 = vrot.slane %v5268_v20, %v5154_v4  ;;  %v1667_v47 = vrot.slane %v5268_v20, %v5157_v5 }
 0x2ce   : > { %v3634_v53 = vcombine.low %v3625_v36, %v3632_v11  ;;  %v2915_v54 = vcombine.low %v1639_v46, %v1643_v60  ;;  %v2916_v55 = vcombine.low %v1647_v41, %v1651_v42  ;;  %v2917_v49 = vcombine.low %v1655_v43, %v1659_v44  ;;  %v5934_v29 = vpop.permute.xlu1 %3758  ;;  %v3750_v60 = vpop.permute.xlu0 %3749 }
 0x2cf   : > { %3791 = vperm.xlu1 %4479, %v2914_v45   ;;  %v3641_v57 = vrot.slane %v3633_v17, %v5162_v9  ;;  %v2918_v51 = vcombine.low %v1663_v12, %v1667_v47  ;;  %v2151_v48 = vrot.slane %v5565_v50, %v5136_v61  ;;  %v2155_v1 = vrot.slane %v5565_v50, %v5139_v63 }
 0x2d0   : > { %v3648_v7 = vrot.slane %v3634_v53, %v5162_v9  ;;  %v2925_v26 = vrot.slane %v2915_v54, %v5162_v9  ;;  %v2932_v20 = vrot.slane %v2916_v55, %v5162_v9  ;;  %v2939_v8 = vrot.slane %v2917_v49, %v5162_v9 }
 0x2d1   : > { %v2946_v39 = vrot.slane %v2918_v51, %v5162_v9  ;;  %v2159_v10 = vrot.slane %v5565_v50, %v5142_v62  ;;  %v2163_v33 = vrot.slane %v5565_v50, %v5145_v0  ;;  %v2167_v61 = vrot.slane %v5565_v50, %v5148_v2 }
 0x2d2   : > { %v3649_v63 = vcombine.low %v3641_v57, %v3648_v7  ;;  %v2947_v6 = vcombine.low %v2925_v26, %v2932_v20  ;;  %v2171_v31 = vrot.slane %v5565_v50, %v5151_v3  ;;  %v2175_v59 = vrot.slane %v5565_v50, %v5154_v4  ;;  %v3753_v30 = vpop.permute.xlu1 %3752 }
 0x2d3   : > { %v2948_v32 = vcombine.low %v2939_v8, %v2946_v39  ;;  %v2179_v14 = vrot.slane %v5565_v50, %v5157_v5  ;;  %v3699_v15 = vcombine.low %v2151_v48, %v2155_v1  ;;  %v3700_v62 = vcombine.low %v2159_v10, %v2163_v33 }
 0x2d4   : > { %3836 = vperm.xlu0 %4480, %v3649_v63   ;;  %v2955_v0 = vrot.slane %v2947_v6, %v5162_v9  ;;  %v3701_v16 = vcombine.low %v2167_v61, %v2171_v31  ;;  %v5957_v45 = vand.u32 127, %v1156_v56 }
 0x2d5   : > { %v2962_v2 = vrot.slane %v2948_v32, %v5162_v9  ;;  %v3702_v18 = vcombine.low %v2175_v59, %v2179_v14  ;;  %v3709_v52 = vrot.slane %v3699_v15, %v5162_v9  ;;  %v3716_v3 = vrot.slane %v3700_v62, %v5162_v9 }
 0x2d6   : > { %v3723_v21 = vrot.slane %v3701_v16, %v5162_v9  ;;  %v5936_v40 = vpop.permute.xlu1 %3767  ;;  %v3850_v12 = vadd.s32 4294967288, %v5957_v45  ;;  %v3848_v47 = vsub.s32 %v5957_v45, %v5131_v58  ;;  %v3857_v54 = vadd.s32 4294967280, %v5957_v45 }
 0x2d7   : > { %v2963_v4 = vcombine.low %v2955_v0, %v2962_v2  ;;  %v3730_v37 = vrot.slane %v3702_v18, %v5162_v9  ;;  %v3731_v22 = vcombine.low %v3709_v52, %v3716_v3  ;;  %v3871_v57 = vadd.s32 4294967264, %v5957_v45 }
 0x2d8   : > { %v3853_v55 = vsub.s32 %v3850_v12, %v5131_v58  ;;  %v3864_v48 = vadd.s32 4294967272, %v5957_v45  ;;  %v3860_v7 = vsub.s32 %v3857_v54, %v5131_v58  ;;  %v3878_v33 = vadd.s32 4294967256, %v5957_v45 }
 0x2d9   : > { %3794 = vperm.xlu1 %4479, %v2963_v4   ;;  %v3732_v5 = vcombine.low %v3723_v21, %v3730_v37  ;;  %v3739_v50 = vrot.slane %v3731_v22, %v5162_v9  ;;  %v3874_v8 = vsub.s32 %v3871_v57, %v5131_v58  ;;  %v3885_v59 = vadd.s32 4294967248, %v5957_v45 }
 0x2da   : > { %v5938_v19 = vpop.permute.xlu1 %3761  ;;  %v3867_v10 = vsub.s32 %v3864_v48, %v5131_v58  ;;  %v3854_v32 = vrot.slane %v3753_v30, %v3853_v55  ;;  %v3881_v14 = vsub.s32 %v3878_v33, %v5131_v58  ;;  %v3849_v0 = vrot.slane %v3750_v60, %v3848_v47 }
 0x2db   : > { %v3746_v23 = vrot.slane %v3732_v5, %v5162_v9  ;;  %v3892_v16 = vadd.s32 4294967240, %v5957_v45  ;;  %v3888_v18 = vsub.s32 %v3885_v59, %v5131_v58  ;;  %v3899_v52 = vadd.s32 4294967232, %v5957_v45 }
 0x2dc   : > { %v5950_v13 = vpop.permute.xlu0 %3776  ;;  %v3856_v21 = vsel %vm3855_vm0, %v3854_v32, %v3849_v0  ;;  %v3861_v37 = vrot.slane %v5932_v28, %v3860_v7  ;;  %v3934_v33 = vadd.s32 4294967192, %v5957_v45  ;;  %v3948_v59 = vadd.s32 4294967176, %v5957_v45 }
 0x2dd   : > { %v3747_v38 = vcombine.low %v3739_v50, %v3746_v23  ;;  %v3895_v5 = vsub.s32 %v3892_v16, %v5131_v58  ;;  %v3902_v30 = vsub.s32 %v3899_v52, %v5131_v58  ;;  %v3941_v32 = vadd.s32 4294967184, %v5957_v45 }
 0x2de   : > { %v5940_v25 = vpop.permute.xlu1 %3770  ;;  %v3863_v23 = vsel %vm3862_vm1, %v3861_v37, %v3856_v21 }
 0x2df   : > { %3842 = vperm.xlu0 %4480, %v3747_v38   ;;  %v3875_v38 = vrot.slane %v5938_v19, %v3874_v8 }
 0x2e2   : > { %v5942_v27 = vpop.permute.xlu1 %3764 }
 0x2e8   : > { %v5944_v34 = vpop.permute.xlu1 %3779 }
 0x2ed   : > { %v5946_v35 = vpop.permute.xlu1 %3773 }
 0x2f3   : > { %v3807_v36 = vpop.permute.xlu0 %3806 }
 0x2f4   : > { %v3972_v31 = vrot.slane %v3807_v36, %v3867_v10  ;;  %v3868_v36 = vrot.slane %v5934_v29, %v3867_v10 }
 0x2f6   : > { %v3870_v12 = vsel %vm3869_vm2, %v3868_v36, %v3863_v23 }
 0x2f7   : > { %v3877_v19 = vsel %vm3876_vm3, %v3875_v38, %v3870_v12 }
 0x2f8   : > { %v5948_v46 = vpop.permute.xlu1 %3782 }
 0x2fe   : > { %v3801_v11 = vpop.permute.xlu0 %3800 }
 0x2ff   : > { %v3962_v1 = vrot.slane %v3801_v11, %v3853_v55  ;;  %v3906_v11 = vadd.s32 4294967224, %v5957_v45  ;;  %v3920_v55 = vadd.s32 4294967208, %v5957_v45 }
 0x301   : > { %v3909_v54 = vsub.s32 %v3906_v11, %v5131_v58  ;;  %v3923_v10 = vsub.s32 %v3920_v55, %v5131_v58 }
 0x303   : > { %v5952_v24 = vpop.permute.xlu1 %3785 }
 0x309   : > { %v3819_v43 = vpop.permute.xlu0 %3818 }
 0x30a   : > { %v3992_v28 = vrot.slane %v3819_v43, %v3895_v5 }
 0x30e   : > { %v5954_v41 = vpop.permute.xlu1 %3788 }
 0x314   : > { %v3813_v17 = vpop.permute.xlu0 %3812 }
 0x315   : > { %v3982_v2 = vrot.slane %v3813_v17, %v3881_v14 }
 0x319   : > { %v3804_v42 = vpop.permute.xlu1 %3803 }
 0x31a   : > { %v3967_v39 = vrot.slane %v3804_v42, %v3860_v7  ;;  %v3882_v42 = vrot.slane %v5942_v27, %v3881_v14  ;;  %v3889_v27 = vrot.slane %v5936_v40, %v3888_v18 }
 0x31c   : > { %v3884_v29 = vsel %vm3883_vm4, %v3882_v42, %v3877_v19 }
 0x31d   : > { %v3891_v57 = vsel %vm3890_vm5, %v3889_v27, %v3884_v29 }
 0x31f   : > { %v5965_v51 = vpop.permute.xlu0 %3827 }
 0x324   : > { %v3798_v44 = vpop.permute.xlu1 %3797 }
 0x325   : > { %v3958_v49 = vrot.slane %v3798_v44, %v3848_v47 }
 0x327   : > { %v3963_v26 = vsel %vm3855_vm0, %v3962_v1, %v3958_v49  ;;  %v3903_v1 = vrot.slane %v5946_v35, %v3902_v30 }
 0x328   : > { %v3968_v61 = vsel %vm3862_vm1, %v3967_v39, %v3963_v26  ;;  %v3896_v26 = vrot.slane %v5940_v25, %v3895_v5  ;;  %v3910_v25 = vrot.slane %v5950_v13, %v3909_v54  ;;  %v3924_v13 = vrot.slane %v5948_v46, %v3923_v10 }
 0x329   : > { %v5974_v63 = vpop.permute.xlu0 %3830  ;;  %v3973_v15 = vsel %vm3869_vm2, %v3972_v31, %v3968_v61 }
 0x32a   : > { %v3898_v39 = vsel %vm3897_vm6, %v3896_v26, %v3891_v57  ;;  %v4012_v31 = vrot.slane %v5974_v63, %v3923_v10 }
 0x32b   : > { %v3905_v61 = vsel %vm3904_vm7, %v3903_v1, %v3898_v39 }
 0x32e   : > { %v3816_v53 = vpop.permute.xlu1 %3815 }
 0x32f   : > { %v3987_v22 = vrot.slane %v3816_v53, %v3888_v18  ;;  %v3913_v53 = vadd.s32 4294967216, %v5957_v45  ;;  %v3951_v18 = vsub.s32 %v3948_v59, %v5131_v58 }
 0x331   : > { %v3916_v48 = vsub.s32 %v3913_v53, %v5131_v58 }
 0x333   : > { %v4007_v40 = vrot.slane %v5965_v51, %v3916_v48  ;;  %v3917_v16 = vrot.slane %v5944_v34, %v3916_v48 }
 0x334   : > { %v3825_v3 = vpop.permute.xlu0 %3824 }
 0x335   : > { %v4002_v49 = vrot.slane %v3825_v3, %v3909_v54  ;;  %v3944_v3 = vsub.s32 %v3941_v32, %v5131_v58 }
 0x339   : > { %v3810_v20 = vpop.permute.xlu1 %3809 }
 0x33a   : > { %v3977_v6 = vrot.slane %v3810_v20, %v3874_v8  ;;  %v3927_v8 = vadd.s32 4294967200, %v5957_v45 }
 0x33c   : > { %v3978_v62 = vsel %vm3876_vm3, %v3977_v6, %v3973_v15  ;;  %v3930_v51 = vsub.s32 %v3927_v8, %v5131_v58  ;;  %v3912_v15 = vsel %vm3911_vm8, %v3910_v25, %v3905_v61 }
 0x33d   : > { %v3983_v4 = vsel %vm3883_vm4, %v3982_v2, %v3978_v62  ;;  %v3937_v62 = vsub.s32 %v3934_v33, %v5131_v58  ;;  %v3919_v52 = vsel %vm3918_vm9, %v3917_v16, %v3912_v15 }
 0x33e   : > { %v3988_v60 = vsel %vm3890_vm5, %v3987_v22, %v3983_v4  ;;  %v5994_v44 = vpop.permute.xlu0 %3839  ;;  %v3931_v45 = vrot.slane %v5952_v24, %v3930_v51  ;;  %v3926_v46 = vsel %vm3925_vm10, %v3924_v13, %v3919_v52 }
 0x33f   : > { %v3993_v47 = vsel %vm3897_vm6, %v3992_v28, %v3988_v60  ;;  %v3938_v37 = vrot.slane %v5954_v41, %v3937_v62  ;;  %v4027_v24 = vrot.slane %v5994_v44, %v3944_v3 }
 0x343   : > { %v3822_v50 = vpop.permute.xlu1 %3821 }
 0x344   : > { %v3997_v17 = vrot.slane %v3822_v50, %v3902_v30  ;;  %v3933_v50 = vsel %vm3932_vm11, %v3931_v45, %v3926_v46 }
 0x345   : > { %v3940_v23 = vsel %vm3939_vm12, %v3938_v37, %v3933_v50 }
 0x346   : > { %v3998_v43 = vsel %vm3904_vm7, %v3997_v17, %v3993_v47 }
 0x347   : > { %v4003_v20 = vsel %vm3911_vm8, %v4002_v49, %v3998_v43 }
 0x348   : > { %v4008_v35 = vsel %vm3918_vm9, %v4007_v40, %v4003_v20 }
 0x349   : > { %v3834_v7 = vpop.permute.xlu0 %3833  ;;  %v4013_v0 = vsel %vm3925_vm10, %v4012_v31, %v4008_v35 }
 0x34a   : > { %v4017_v2 = vrot.slane %v3834_v7, %v3930_v51 }
 0x34c   : > { %v4018_v21 = vsel %vm3932_vm11, %v4017_v2, %v4013_v0 }
 0x34e   : > { %v3792_v6 = vpop.permute.xlu1 %3791 }
 0x34f   : > { %v3945_v34 = vrot.slane %v3792_v6, %v3944_v3 }
 0x351   : > { %v3947_v30 = vsel %vm3946_vm13, %v3945_v34, %v3940_v23 }
 0x353   : > { %v3837_v14 = vpop.permute.xlu0 %3836 }
 0x354   : > { %v4022_v63 = vrot.slane %v3837_v14, %v3937_v62 }
 0x356   : > { %v4023_v22 = vsel %vm3939_vm12, %v4022_v63, %v4018_v21 }
 0x357   : > { %v4028_v41 = vsel %vm3946_vm13, %v4027_v24, %v4023_v22 }
 0x358   : > { %v3795_v4 = vpop.permute.xlu1 %3794 }
 0x359   : > { %v3952_v5 = vrot.slane %v3795_v4, %v3951_v18 }
 0x35b   : > { %v3954_v60 = vsel %vm3953_vm14, %v3952_v5, %v3947_v30 }
 0x35e   : > { %v3843_v58 = vpop.permute.xlu0 %3842 }
 0x35f   : > { %v4032_v38 = vrot.slane %v3843_v58, %v3951_v18 }
 0x361   : > { %v4033_v36 = vsel %vm3953_vm14, %v4032_v38, %v4028_v41 }
 0x362   : > { %v4034_v11 = vcombine.low %v3954_v60, %v4033_v36 }
 0x364   : > { %v4041_v42 = vrot.slane %v4034_v11, %v5162_v9 }
 0x366   : > { %v4048_v28 = vrot.slane %v4041_v42, %v5162_v9 }
 0x368   : > { %4054 = vst.msk [vmem:[%s366_s0] sm:$0x3] %vm4052_vm15, %v4048_v28 }
 0x369   : > { %4626 = shalt.err (!%p4623_p7)
}
 0x36a   : > { %s4627_s3 = scalar_lea.hbm %s6044_s19, 32  ;;  %s4631_s23 = scalar_lea.hbm %s6095_s7, 64 }
 0x36b   : > { %p4628_p9 = scmp.ne.s32.totalorder %s6044_s19, %s4627_s3  ;;  %p4632_p11 = scmp.lt.u32.totalorder %s6044_s19, %s6095_s7 }
 0x36c   : > { %p4633_p1 = scmp.lt.u32.totalorder %s4631_s23, %s4627_s3  ;;  %p4635_p2 = scmp.lt.u32.totalorder %s4627_s3, %s6044_s19 }
 0x36d   : > { %p4629_p0 = pnand %p4628_p9, %p6117_p13 }
 0x36e   : > { %p4634_p12 = por %p4633_p1, %p4632_p11 }
 0x36f   : > { %p4630_p8 = pneg %p4629_p0 }
 0x370   : > { %p4636_p6 = por %p4635_p2, %p4634_p12 }
 0x372   : > { %p4637_p10 = pnand %p4636_p6, %p4630_p8 }
 0x374   : > { %4640 = shalt.err (!%p4637_p10)
}
 0x375   : > { %4413 = dma.vmem_to_hbm [thread:$0]  (%p6117_p13), %s6046_s18, 32, %s6044_s19, %s4056_s6  }
 0x376 PF: > { %s4082_s25 = sand.u32 1, %s4679_s26   ;;  %p6118_p4 = scmp.ne.s32.totalorder %s6103_s9, 0 }
 0x377   : > { %p6119_p5 = scmp.ge.s32.totalorder %s4691_s29, 2  ;;  %s4083_s22 = scalar_lea.sflag [#allocation5], %s4082_s25 }
 0x379   : > { %p4430_p3 = pnand %p6119_p5, %p6118_p4 }
 0x37b   : > { %4674 = dma.done.wait (!%p4430_p3), %s4083_s22, 32  }
 0x37c   : > { %4676 = vsyncadd (!%p4430_p3), %s4083_s22, 4294967264  ;;  %p25_p7 = scmp.ge.s32.totalorder %s4857_s30, 4   ;;  %s6120_s26 = smov %s4683_s27 }
 0x37d   : > { %s6121_s27 = smov %s4687_s28  ;;  %s6122_s28 = smov %s4873_s16 }
 0x37e   : > { %s6123_s29 = smov %s4857_s30  ;;  %27 = sbr.rel (!%p25_p7) target bundleno = 13 (0xd), region = 114 }
 0x385   :  { %4088 = vsyncpa [#allocation4], 1 }
 0x386   :  { %4090 = vsyncpa [#allocation4 + $0x1], 1 }
 0x387   :  { %4091 = vsyncpa [#allocation7], 1 }
 0x388   :  { %4093 = vsyncpa [#allocation7 + $0x1], 1 }
 0x389   :  { %4094 = vsyncpa [#allocation10], 1 }
 0x38a   :  { %4095 = vsyncpa [#allocation5], 1 }
 0x38b   :  { %4097 = vsyncpa [#allocation5 + $0x1], 1 }

</bundles_post_ra>
